<compile_context>
chip_gen: v6e
topology: v6e:2x2x1
jax: 0.10.0
libtpu: 0.0.40
codegen_flags: <defaults>
</compile_context>

<pallas_src>
import math
import jax
import jax.numpy as jnp
from jax.experimental import pallas as pl
from jax.experimental.pallas import tpu as pltpu

LRELU_SLOPE = 0.2
ACT_GAIN = math.sqrt(2.0)      # folded into weights/biases at setup time
N_LAYERS = 4
SUB = 128                      # inner sub-tile rows (bounds vreg pressure)
MIN_GRID_STEPS = 4             # >= 2 steps per TensorCore on v7x; harmless on v5e/v6e


def _round_up(x, m):
    return (x + m - 1) // m * m


def _default_act_dtype():
    # bf16 elementwise only on chips with bf16 VALUs (v6e / v7x); f32 elsewhere.
    try:
        kind = jax.devices()[0].device_kind.lower()
    except Exception:
        return jnp.float32
    if any(t in kind for t in ("v2", "v3", "v4", "v5")):
        return jnp.float32
    return jnp.bfloat16


def _fc_lrelu(x, w_bf16, b_f32, act_dtype):
    # x: (rows, Z) act_dtype; w: (Z, Z) bf16 ([in, out], gain-folded); b: (1, Z) f32 (gain-folded)
    y = jnp.dot(x.astype(jnp.bfloat16), w_bf16, preferred_element_type=jnp.float32)
    y = y.astype(act_dtype) + b_f32.astype(act_dtype)
    # lrelu; sqrt(2) gain already folded into w/b (positive homogeneity of lrelu).
    return jnp.maximum(y, LRELU_SLOPE * y)


def make_swapper_kernel(n_sub, rows, act_dtype):
    """Kernel specialized on the number of 128-row sub-slices per grid step."""

    def swapper_kernel(latent_ref, gmult_ref, w_dis_ref, b_dis_ref,
                       w_ent_ref, b_ent_ref, gvec_ref, out_ref):
        gvec = gvec_ref[...].astype(act_dtype)                    # (1, Z), VMEM-resident

        def run_rows(row_start):
            x = latent_ref[pl.ds(row_start, rows), :].astype(act_dtype)
            gm = gmult_ref[pl.ds(row_start, rows), :].astype(act_dtype)

            # disentangler: 4 FC + lrelu layers (statically unrolled over layers)
            for l in range(N_LAYERS):
                x = _fc_lrelu(x, w_dis_ref[l], b_dis_ref[l], act_dtype)

            # gender-conditioned shift: x += (gender*2-1) * gvec
            x = x + gm * gvec                                     # (rows,1)*(1,Z) -> (rows,Z)

            # entangler: 4 FC + lrelu layers
            for l in range(N_LAYERS):
                x = _fc_lrelu(x, w_ent_ref[l], b_ent_ref[l], act_dtype)

            out_ref[pl.ds(row_start, rows), :] = x.astype(out_ref.dtype)

        if n_sub == 1:
            run_rows(0)
        else:
            # Non-unrolled loop bounds live activation ranges to one 128-row slice.
            @pl.loop(0, n_sub)
            def _(r):
                run_rows(pl.multiple_of(r * rows, rows))

    return swapper_kernel


def latent_swapper_v0(latent, gender, w_dis, b_dis, w_ent, b_ent, gvec, *,
                      block_b=512, act_dtype=None, out_dtype=None, alias_input=False):
    """latent: (B, Z) f32; gender: (B, 1); w_*: (4, Z, Z) bf16 (pre-transposed [in,out],
    pre-scaled by 1/sqrt(Z)*sqrt(2)); b_*: (4, 1, Z) f32 (pre-scaled by sqrt(2));
    gvec: (1, Z) f32."""
    B, Z = latent.shape
    if act_dtype is None:
        act_dtype = _default_act_dtype()
    if out_dtype is None:
        out_dtype = latent.dtype

    # --- choose batch tile TB ---
    # Keep it as large as possible (amortize per-step overhead) while preserving
    # >= MIN_GRID_STEPS grid steps (pipelining + both v7x TensorCores busy).
    B8 = _round_up(B, 8)
    if B8 <= SUB:
        TB = B8                                   # tiny batch: single small block
    else:
        B128 = _round_up(B, SUB)
        tb_cap = max(SUB, (B128 // MIN_GRID_STEPS) // SUB * SUB)
        TB = min(_round_up(block_b, SUB), tb_cap, B128)
    B_pad = _round_up(B, TB)
    n_blocks = B_pad // TB
    n_sub = TB // SUB if TB > SUB else 1
    rows = SUB if n_sub > 1 else TB

    gmult = gender.astype(jnp.float32) * 2.0 - 1.0          # (B, 1), off the kernel critical path
    lat = latent
    if B_pad != B:
        lat = jnp.pad(lat, ((0, B_pad - B), (0, 0)))
        gmult = jnp.pad(gmult, ((0, B_pad - B), (0, 0)))

    flops = 2 * (2 * N_LAYERS) * B_pad * Z * Z
    bytes_accessed = ((w_dis.size + w_ent.size) * 2                       # bf16 weights
                      + (b_dis.size + b_ent.size + gvec.size) * 4
                      + (B_pad * Z) * (lat.dtype.itemsize + jnp.dtype(out_dtype).itemsize)
                      + B_pad * 4)                                        # gmult

    io_aliases = {}
    if alias_input and jnp.dtype(out_dtype) == lat.dtype:
        io_aliases = {0: 0}        # only valid if caller never reuses `latent` afterwards

    out = pl.pallas_call(
        make_swapper_kernel(n_sub, rows, act_dtype),
        out_shape=jax.ShapeDtypeStruct((B_pad, Z), out_dtype),
        grid_spec=pltpu.PrefetchScalarGridSpec(
            num_scalar_prefetch=0,
            grid=(n_blocks,),
            in_specs=[
                pl.BlockSpec((TB, Z), lambda i: (i, 0)),                 # latent tile (streamed)
                pl.BlockSpec((TB, 1), lambda i: (i, 0)),                 # gmult tile (streamed)
                pl.BlockSpec((N_LAYERS, Z, Z), lambda i: (0, 0, 0)),     # disentangler W (resident)
                pl.BlockSpec((N_LAYERS, 1, Z), lambda i: (0, 0, 0)),     # disentangler b (resident)
                pl.BlockSpec((N_LAYERS, Z, Z), lambda i: (0, 0, 0)),     # entangler W (resident)
                pl.BlockSpec((N_LAYERS, 1, Z), lambda i: (0, 0, 0)),     # entangler b (resident)
                pl.BlockSpec((1, Z), lambda i: (0, 0)),                  # gvec (resident)
            ],
            out_specs=pl.BlockSpec((TB, Z), lambda i: (i, 0)),
        ),
        compiler_params=pltpu.CompilerParams(
            dimension_semantics=("parallel",)),
        cost_estimate=pl.CostEstimate(flops=flops, transcendentals=0,
                                      bytes_accessed=bytes_accessed),
        input_output_aliases=io_aliases,
    )(lat, gmult, w_dis, b_dis, w_ent, b_ent, gvec)

    return out[:B] if B_pad != B else out


def reference_jax(latent, gender, w_dis, b_dis, w_ent, b_ent, gvec, act_dtype):
    # Mirrors the kernel's numerics exactly (bf16 matmul inputs, f32 accumulate,
    # elementwise in act_dtype).
    x = latent.astype(act_dtype)
    gmult = (gender.astype(jnp.float32) * 2.0 - 1.0).astype(act_dtype)
    for l in range(N_LAYERS):
        y = jnp.dot(x.astype(jnp.bfloat16), w_dis[l], preferred_element_type=jnp.float32)
        y = y.astype(act_dtype) + b_dis[l].astype(act_dtype)
        x = jnp.maximum(y, LRELU_SLOPE * y)
    x = x + gmult * gvec.astype(act_dtype)
    for l in range(N_LAYERS):
        y = jnp.dot(x.astype(jnp.bfloat16), w_ent[l], preferred_element_type=jnp.float32)
        y = y.astype(act_dtype) + b_ent[l].astype(act_dtype)
        x = jnp.maximum(y, LRELU_SLOPE * y)
    return x.astype(latent.dtype)


if __name__ == "__main__":
    # Small shapes consistent with the module: z_dims=128 latents.
    # Two batch sizes so both code paths are exercised:
    #   B=256  -> TB=128, 2 grid steps, single sub-slice per step
    #   B=1024 -> TB=256, 4 grid steps, 2 x 128-row sub-slices per step (inner pl.loop)
    Z = 128
    key = jax.random.PRNGKey(0)
    k_lat, k_g, k_wd, k_we, k_gvec = jax.random.split(key, 5)

    # FullyConnectedLayer glue: weight ~ randn [out,in]; runtime scale 1/sqrt(in);
    # pre-transpose to [in,out], fold the sqrt(2) lrelu gain, cast to bf16 for the MXU.
    weight_scale = (1.0 / math.sqrt(Z)) * ACT_GAIN
    w_dis = (jax.random.normal(k_wd, (N_LAYERS, Z, Z), dtype=jnp.float32)
             * weight_scale).astype(jnp.bfloat16)
    w_ent = (jax.random.normal(k_we, (N_LAYERS, Z, Z), dtype=jnp.float32)
             * weight_scale).astype(jnp.bfloat16)
    b_dis = jnp.zeros((N_LAYERS, 1, Z), dtype=jnp.float32) * ACT_GAIN   # bias_init = 0
    b_ent = jnp.zeros((N_LAYERS, 1, Z), dtype=jnp.float32) * ACT_GAIN
    gvec = jax.random.normal(k_gvec, (1, Z), dtype=jnp.float32)

    act_dtype = _default_act_dtype()

    for B in (256, 1024):
        kl, kg = jax.random.split(jax.random.fold_in(k_lat, B), 2)
        latent = jax.random.normal(kl, (B, Z), dtype=jnp.float32)
        gender = jax.random.bernoulli(kg, 0.5, (B, 1)).astype(jnp.float32)   # {0,1}

        out = latent_swapper_v0(latent, gender, w_dis, b_dis, w_ent, b_ent, gvec)
        out = jax.block_until_ready(out)

        ref = reference_jax(latent, gender, w_dis, b_dis, w_ent, b_ent, gvec, act_dtype)
        assert out.shape == (B, Z)
        assert jnp.allclose(out, ref, atol=1e-2, rtol=1e-2), f"mismatch vs reference (B={B})"

    print("KERNEL_OK")
</pallas_src>

<mosaic_0001>
module attributes {stable_mosaic.version = 11 : i64} {
  func.func @swapper_kernel(%arg0: i32, %arg1: memref<128x128xf32, #tpu.memory_space<vmem>>, %arg2: memref<128x1xf32, #tpu.memory_space<vmem>>, %arg3: memref<4x128x128xbf16, #tpu.memory_space<vmem>>, %arg4: memref<4x1x128xf32, #tpu.memory_space<vmem>>, %arg5: memref<4x128x128xbf16, #tpu.memory_space<vmem>>, %arg6: memref<4x1x128xf32, #tpu.memory_space<vmem>>, %arg7: memref<1x128xf32, #tpu.memory_space<vmem>>, %arg8: memref<128x128xf32, #tpu.memory_space<vmem>>) attributes {dimension_semantics = [#tpu.dimension_semantics<parallel>], iteration_bounds = array<i64: 2>, scalar_prefetch = 0 : i64, scratch_operands = 0 : i64, tpu.core_type = #tpu.core_type<tc>, window_params = [{transform_indices = @transform_0, window_bounds = array<i64: 128, 128>}, {transform_indices = @transform_1, window_bounds = array<i64: 128, 1>}, {pipeline_mode = #tpu.pipeline_mode<synchronous>, transform_indices = @transform_2, window_bounds = array<i64: 4, 128, 128>}, {pipeline_mode = #tpu.pipeline_mode<synchronous>, transform_indices = @transform_3, window_bounds = array<i64: 4, 1, 128>}, {pipeline_mode = #tpu.pipeline_mode<synchronous>, transform_indices = @transform_4, window_bounds = array<i64: 4, 128, 128>}, {pipeline_mode = #tpu.pipeline_mode<synchronous>, transform_indices = @transform_5, window_bounds = array<i64: 4, 1, 128>}, {pipeline_mode = #tpu.pipeline_mode<synchronous>, transform_indices = @transform_6, window_bounds = array<i64: 1, 128>}, {transform_indices = @transform_7, window_bounds = array<i64: 128, 128>}]} {
    %c0 = arith.constant 0 : index
    %c0_0 = arith.constant 0 : index
    %0 = vector.load %arg7[%c0, %c0_0] : memref<1x128xf32, #tpu.memory_space<vmem>>, vector<1x128xf32>
    %1 = arith.truncf %0 : vector<1x128xf32> to vector<1x128xbf16>
    %c0_1 = arith.constant 0 : index
    %c0_2 = arith.constant 0 : index
    %2 = vector.load %arg1[%c0_1, %c0_2] : memref<128x128xf32, #tpu.memory_space<vmem>>, vector<128x128xf32>
    %3 = arith.truncf %2 : vector<128x128xf32> to vector<128x128xbf16>
    %c0_3 = arith.constant 0 : index
    %c0_4 = arith.constant 0 : index
    %4 = vector.load %arg2[%c0_3, %c0_4] : memref<128x1xf32, #tpu.memory_space<vmem>>, vector<128x1xf32>
    %5 = arith.truncf %4 : vector<128x1xf32> to vector<128x1xbf16>
    %c0_5 = arith.constant 0 : index
    %c0_6 = arith.constant 0 : index
    %c0_7 = arith.constant 0 : index
    %6 = vector.load %arg3[%c0_5, %c0_6, %c0_7] : memref<4x128x128xbf16, #tpu.memory_space<vmem>>, vector<1x128x128xbf16>
    %7 = vector.shape_cast %6 : vector<1x128x128xbf16> to vector<128x128xbf16>
    %c0_8 = arith.constant 0 : index
    %c0_9 = arith.constant 0 : index
    %c0_10 = arith.constant 0 : index
    %8 = vector.load %arg4[%c0_8, %c0_9, %c0_10] : memref<4x1x128xf32, #tpu.memory_space<vmem>>, vector<1x1x128xf32>
    %9 = vector.shape_cast %8 : vector<1x1x128xf32> to vector<1x128xf32>
    %cst = arith.constant dense<0.000000e+00> : vector<128x128xf32>
    %10 = tpu.matmul %3, %7, %cst {dimension_numbers = #tpu.dot_dimension_numbers<[1], [0], [0], [1], [0, 0, 1, 1], [], []>} : vector<128x128xbf16>, vector<128x128xbf16>, vector<128x128xf32> -> vector<128x128xf32>
    %11 = arith.truncf %10 : vector<128x128xf32> to vector<128x128xbf16>
    %12 = arith.truncf %9 : vector<1x128xf32> to vector<1x128xbf16>
    %13 = vector.broadcast %12 : vector<1x128xbf16> to vector<128x128xbf16>
    %14 = arith.addf %11, %13 : vector<128x128xbf16>
    %cst_11 = arith.constant 2.001950e-01 : bf16
    %15 = vector.broadcast %cst_11 : bf16 to vector<128x128xbf16>
    %16 = arith.mulf %15, %14 : vector<128x128xbf16>
    %17 = arith.maximumf %14, %16 : vector<128x128xbf16>
    %c1 = arith.constant 1 : index
    %c0_12 = arith.constant 0 : index
    %c0_13 = arith.constant 0 : index
    %18 = vector.load %arg3[%c1, %c0_12, %c0_13] : memref<4x128x128xbf16, #tpu.memory_space<vmem>>, vector<1x128x128xbf16>
    %19 = vector.shape_cast %18 : vector<1x128x128xbf16> to vector<128x128xbf16>
    %c1_14 = arith.constant 1 : index
    %c0_15 = arith.constant 0 : index
    %c0_16 = arith.constant 0 : index
    %20 = vector.load %arg4[%c1_14, %c0_15, %c0_16] : memref<4x1x128xf32, #tpu.memory_space<vmem>>, vector<1x1x128xf32>
    %21 = vector.shape_cast %20 : vector<1x1x128xf32> to vector<1x128xf32>
    %cst_17 = arith.constant dense<0.000000e+00> : vector<128x128xf32>
    %22 = tpu.matmul %17, %19, %cst_17 {dimension_numbers = #tpu.dot_dimension_numbers<[1], [0], [0], [1], [0, 0, 1, 1], [], []>} : vector<128x128xbf16>, vector<128x128xbf16>, vector<128x128xf32> -> vector<128x128xf32>
    %23 = arith.truncf %22 : vector<128x128xf32> to vector<128x128xbf16>
    %24 = arith.truncf %21 : vector<1x128xf32> to vector<1x128xbf16>
    %25 = vector.broadcast %24 : vector<1x128xbf16> to vector<128x128xbf16>
    %26 = arith.addf %23, %25 : vector<128x128xbf16>
    %cst_18 = arith.constant 2.001950e-01 : bf16
    %27 = vector.broadcast %cst_18 : bf16 to vector<128x128xbf16>
    %28 = arith.mulf %27, %26 : vector<128x128xbf16>
    %29 = arith.maximumf %26, %28 : vector<128x128xbf16>
    %c2 = arith.constant 2 : index
    %c0_19 = arith.constant 0 : index
    %c0_20 = arith.constant 0 : index
    %30 = vector.load %arg3[%c2, %c0_19, %c0_20] : memref<4x128x128xbf16, #tpu.memory_space<vmem>>, vector<1x128x128xbf16>
    %31 = vector.shape_cast %30 : vector<1x128x128xbf16> to vector<128x128xbf16>
    %c2_21 = arith.constant 2 : index
    %c0_22 = arith.constant 0 : index
    %c0_23 = arith.constant 0 : index
    %32 = vector.load %arg4[%c2_21, %c0_22, %c0_23] : memref<4x1x128xf32, #tpu.memory_space<vmem>>, vector<1x1x128xf32>
    %33 = vector.shape_cast %32 : vector<1x1x128xf32> to vector<1x128xf32>
    %cst_24 = arith.constant dense<0.000000e+00> : vector<128x128xf32>
    %34 = tpu.matmul %29, %31, %cst_24 {dimension_numbers = #tpu.dot_dimension_numbers<[1], [0], [0], [1], [0, 0, 1, 1], [], []>} : vector<128x128xbf16>, vector<128x128xbf16>, vector<128x128xf32> -> vector<128x128xf32>
    %35 = arith.truncf %34 : vector<128x128xf32> to vector<128x128xbf16>
    %36 = arith.truncf %33 : vector<1x128xf32> to vector<1x128xbf16>
    %37 = vector.broadcast %36 : vector<1x128xbf16> to vector<128x128xbf16>
    %38 = arith.addf %35, %37 : vector<128x128xbf16>
    %cst_25 = arith.constant 2.001950e-01 : bf16
    %39 = vector.broadcast %cst_25 : bf16 to vector<128x128xbf16>
    %40 = arith.mulf %39, %38 : vector<128x128xbf16>
    %41 = arith.maximumf %38, %40 : vector<128x128xbf16>
    %c3 = arith.constant 3 : index
    %c0_26 = arith.constant 0 : index
    %c0_27 = arith.constant 0 : index
    %42 = vector.load %arg3[%c3, %c0_26, %c0_27] : memref<4x128x128xbf16, #tpu.memory_space<vmem>>, vector<1x128x128xbf16>
    %43 = vector.shape_cast %42 : vector<1x128x128xbf16> to vector<128x128xbf16>
    %c3_28 = arith.constant 3 : index
    %c0_29 = arith.constant 0 : index
    %c0_30 = arith.constant 0 : index
    %44 = vector.load %arg4[%c3_28, %c0_29, %c0_30] : memref<4x1x128xf32, #tpu.memory_space<vmem>>, vector<1x1x128xf32>
    %45 = vector.shape_cast %44 : vector<1x1x128xf32> to vector<1x128xf32>
    %cst_31 = arith.constant dense<0.000000e+00> : vector<128x128xf32>
    %46 = tpu.matmul %41, %43, %cst_31 {dimension_numbers = #tpu.dot_dimension_numbers<[1], [0], [0], [1], [0, 0, 1, 1], [], []>} : vector<128x128xbf16>, vector<128x128xbf16>, vector<128x128xf32> -> vector<128x128xf32>
    %47 = arith.truncf %46 : vector<128x128xf32> to vector<128x128xbf16>
    %48 = arith.truncf %45 : vector<1x128xf32> to vector<1x128xbf16>
    %49 = vector.broadcast %48 : vector<1x128xbf16> to vector<128x128xbf16>
    %50 = arith.addf %47, %49 : vector<128x128xbf16>
    %cst_32 = arith.constant 2.001950e-01 : bf16
    %51 = vector.broadcast %cst_32 : bf16 to vector<128x128xbf16>
    %52 = arith.mulf %51, %50 : vector<128x128xbf16>
    %53 = arith.maximumf %50, %52 : vector<128x128xbf16>
    %54 = vector.broadcast %5 : vector<128x1xbf16> to vector<128x128xbf16>
    %55 = vector.broadcast %1 : vector<1x128xbf16> to vector<128x128xbf16>
    %56 = arith.mulf %54, %55 : vector<128x128xbf16>
    %57 = arith.addf %53, %56 : vector<128x128xbf16>
    %c0_33 = arith.constant 0 : index
    %c0_34 = arith.constant 0 : index
    %c0_35 = arith.constant 0 : index
    %58 = vector.load %arg5[%c0_33, %c0_34, %c0_35] : memref<4x128x128xbf16, #tpu.memory_space<vmem>>, vector<1x128x128xbf16>
    %59 = vector.shape_cast %58 : vector<1x128x128xbf16> to vector<128x128xbf16>
    %c0_36 = arith.constant 0 : index
    %c0_37 = arith.constant 0 : index
    %c0_38 = arith.constant 0 : index
    %60 = vector.load %arg6[%c0_36, %c0_37, %c0_38] : memref<4x1x128xf32, #tpu.memory_space<vmem>>, vector<1x1x128xf32>
    %61 = vector.shape_cast %60 : vector<1x1x128xf32> to vector<1x128xf32>
    %cst_39 = arith.constant dense<0.000000e+00> : vector<128x128xf32>
    %62 = tpu.matmul %57, %59, %cst_39 {dimension_numbers = #tpu.dot_dimension_numbers<[1], [0], [0], [1], [0, 0, 1, 1], [], []>} : vector<128x128xbf16>, vector<128x128xbf16>, vector<128x128xf32> -> vector<128x128xf32>
    %63 = arith.truncf %62 : vector<128x128xf32> to vector<128x128xbf16>
    %64 = arith.truncf %61 : vector<1x128xf32> to vector<1x128xbf16>
    %65 = vector.broadcast %64 : vector<1x128xbf16> to vector<128x128xbf16>
    %66 = arith.addf %63, %65 : vector<128x128xbf16>
    %cst_40 = arith.constant 2.001950e-01 : bf16
    %67 = vector.broadcast %cst_40 : bf16 to vector<128x128xbf16>
    %68 = arith.mulf %67, %66 : vector<128x128xbf16>
    %69 = arith.maximumf %66, %68 : vector<128x128xbf16>
    %c1_41 = arith.constant 1 : index
    %c0_42 = arith.constant 0 : index
    %c0_43 = arith.constant 0 : index
    %70 = vector.load %arg5[%c1_41, %c0_42, %c0_43] : memref<4x128x128xbf16, #tpu.memory_space<vmem>>, vector<1x128x128xbf16>
    %71 = vector.shape_cast %70 : vector<1x128x128xbf16> to vector<128x128xbf16>
    %c1_44 = arith.constant 1 : index
    %c0_45 = arith.constant 0 : index
    %c0_46 = arith.constant 0 : index
    %72 = vector.load %arg6[%c1_44, %c0_45, %c0_46] : memref<4x1x128xf32, #tpu.memory_space<vmem>>, vector<1x1x128xf32>
    %73 = vector.shape_cast %72 : vector<1x1x128xf32> to vector<1x128xf32>
    %cst_47 = arith.constant dense<0.000000e+00> : vector<128x128xf32>
    %74 = tpu.matmul %69, %71, %cst_47 {dimension_numbers = #tpu.dot_dimension_numbers<[1], [0], [0], [1], [0, 0, 1, 1], [], []>} : vector<128x128xbf16>, vector<128x128xbf16>, vector<128x128xf32> -> vector<128x128xf32>
    %75 = arith.truncf %74 : vector<128x128xf32> to vector<128x128xbf16>
    %76 = arith.truncf %73 : vector<1x128xf32> to vector<1x128xbf16>
    %77 = vector.broadcast %76 : vector<1x128xbf16> to vector<128x128xbf16>
    %78 = arith.addf %75, %77 : vector<128x128xbf16>
    %cst_48 = arith.constant 2.001950e-01 : bf16
    %79 = vector.broadcast %cst_48 : bf16 to vector<128x128xbf16>
    %80 = arith.mulf %79, %78 : vector<128x128xbf16>
    %81 = arith.maximumf %78, %80 : vector<128x128xbf16>
    %c2_49 = arith.constant 2 : index
    %c0_50 = arith.constant 0 : index
    %c0_51 = arith.constant 0 : index
    %82 = vector.load %arg5[%c2_49, %c0_50, %c0_51] : memref<4x128x128xbf16, #tpu.memory_space<vmem>>, vector<1x128x128xbf16>
    %83 = vector.shape_cast %82 : vector<1x128x128xbf16> to vector<128x128xbf16>
    %c2_52 = arith.constant 2 : index
    %c0_53 = arith.constant 0 : index
    %c0_54 = arith.constant 0 : index
    %84 = vector.load %arg6[%c2_52, %c0_53, %c0_54] : memref<4x1x128xf32, #tpu.memory_space<vmem>>, vector<1x1x128xf32>
    %85 = vector.shape_cast %84 : vector<1x1x128xf32> to vector<1x128xf32>
    %cst_55 = arith.constant dense<0.000000e+00> : vector<128x128xf32>
    %86 = tpu.matmul %81, %83, %cst_55 {dimension_numbers = #tpu.dot_dimension_numbers<[1], [0], [0], [1], [0, 0, 1, 1], [], []>} : vector<128x128xbf16>, vector<128x128xbf16>, vector<128x128xf32> -> vector<128x128xf32>
    %87 = arith.truncf %86 : vector<128x128xf32> to vector<128x128xbf16>
    %88 = arith.truncf %85 : vector<1x128xf32> to vector<1x128xbf16>
    %89 = vector.broadcast %88 : vector<1x128xbf16> to vector<128x128xbf16>
    %90 = arith.addf %87, %89 : vector<128x128xbf16>
    %cst_56 = arith.constant 2.001950e-01 : bf16
    %91 = vector.broadcast %cst_56 : bf16 to vector<128x128xbf16>
    %92 = arith.mulf %91, %90 : vector<128x128xbf16>
    %93 = arith.maximumf %90, %92 : vector<128x128xbf16>
    %c3_57 = arith.constant 3 : index
    %c0_58 = arith.constant 0 : index
    %c0_59 = arith.constant 0 : index
    %94 = vector.load %arg5[%c3_57, %c0_58, %c0_59] : memref<4x128x128xbf16, #tpu.memory_space<vmem>>, vector<1x128x128xbf16>
    %95 = vector.shape_cast %94 : vector<1x128x128xbf16> to vector<128x128xbf16>
    %c3_60 = arith.constant 3 : index
    %c0_61 = arith.constant 0 : index
    %c0_62 = arith.constant 0 : index
    %96 = vector.load %arg6[%c3_60, %c0_61, %c0_62] : memref<4x1x128xf32, #tpu.memory_space<vmem>>, vector<1x1x128xf32>
    %97 = vector.shape_cast %96 : vector<1x1x128xf32> to vector<1x128xf32>
    %cst_63 = arith.constant dense<0.000000e+00> : vector<128x128xf32>
    %98 = tpu.matmul %93, %95, %cst_63 {dimension_numbers = #tpu.dot_dimension_numbers<[1], [0], [0], [1], [0, 0, 1, 1], [], []>} : vector<128x128xbf16>, vector<128x128xbf16>, vector<128x128xf32> -> vector<128x128xf32>
    %99 = arith.truncf %98 : vector<128x128xf32> to vector<128x128xbf16>
    %100 = arith.truncf %97 : vector<1x128xf32> to vector<1x128xbf16>
    %101 = vector.broadcast %100 : vector<1x128xbf16> to vector<128x128xbf16>
    %102 = arith.addf %99, %101 : vector<128x128xbf16>
    %cst_64 = arith.constant 2.001950e-01 : bf16
    %103 = vector.broadcast %cst_64 : bf16 to vector<128x128xbf16>
    %104 = arith.mulf %103, %102 : vector<128x128xbf16>
    %105 = arith.maximumf %102, %104 : vector<128x128xbf16>
    %106 = arith.extf %105 : vector<128x128xbf16> to vector<128x128xf32>
    %c0_65 = arith.constant 0 : index
    %c0_66 = arith.constant 0 : index
    %107 = vector.load %arg8[%c0_65, %c0_66] : memref<128x128xf32, #tpu.memory_space<vmem>>, vector<128x128xf32>
    tpu.vector_store %arg8[%c0_65, %c0_66], %106 {strides = array<i32>} : memref<128x128xf32, #tpu.memory_space<vmem>>, vector<128x128xf32>,
    return
  }
  func.func @transform_0(%arg0: i32) -> (i32, i32) {
    %c0_i32 = arith.constant 0 : i32
    %c0_i32_0 = arith.constant 0 : i32
    return %arg0, %c0_i32 : i32, i32
  }
  func.func @transform_1(%arg0: i32) -> (i32, i32) {
    %c0_i32 = arith.constant 0 : i32
    %c0_i32_0 = arith.constant 0 : i32
    return %arg0, %c0_i32 : i32, i32
  }
  func.func @transform_2(%arg0: i32) -> (i32, i32, i32) {
    %c0_i32 = arith.constant 0 : i32
    %c0_i32_0 = arith.constant 0 : i32
    %c0_i32_1 = arith.constant 0 : i32
    %c0_i32_2 = arith.constant 0 : i32
    return %c0_i32, %c0_i32_0, %c0_i32_1 : i32, i32, i32
  }
  func.func @transform_3(%arg0: i32) -> (i32, i32, i32) {
    %c0_i32 = arith.constant 0 : i32
    %c0_i32_0 = arith.constant 0 : i32
    %c0_i32_1 = arith.constant 0 : i32
    %c0_i32_2 = arith.constant 0 : i32
    return %c0_i32, %c0_i32_0, %c0_i32_1 : i32, i32, i32
  }
  func.func @transform_4(%arg0: i32) -> (i32, i32, i32) {
    %c0_i32 = arith.constant 0 : i32
    %c0_i32_0 = arith.constant 0 : i32
    %c0_i32_1 = arith.constant 0 : i32
    %c0_i32_2 = arith.constant 0 : i32
    return %c0_i32, %c0_i32_0, %c0_i32_1 : i32, i32, i32
  }
  func.func @transform_5(%arg0: i32) -> (i32, i32, i32) {
    %c0_i32 = arith.constant 0 : i32
    %c0_i32_0 = arith.constant 0 : i32
    %c0_i32_1 = arith.constant 0 : i32
    %c0_i32_2 = arith.constant 0 : i32
    return %c0_i32, %c0_i32_0, %c0_i32_1 : i32, i32, i32
  }
  func.func @transform_6(%arg0: i32) -> (i32, i32) {
    %c0_i32 = arith.constant 0 : i32
    %c0_i32_0 = arith.constant 0 : i32
    %c0_i32_1 = arith.constant 0 : i32
    return %c0_i32, %c0_i32_0 : i32, i32
  }
  func.func @transform_7(%arg0: i32) -> (i32, i32) {
    %c0_i32 = arith.constant 0 : i32
    %c0_i32_0 = arith.constant 0 : i32
    return %arg0, %c0_i32 : i32, i32
  }
}

</mosaic_0001>

<bundles_post_ra>
// kernel: tpu_custom_call.1
= control target key start
LH: loop header
LB: loop body
LE: loop exit
PB: predicated region body
PF: predicated region fallthrough
CT: control target
= control target key end

     0   :  { %12 = vsyncpa [#allocation3], 0  ;;  %s3270_s0 = inlined_call_operand.vmem [shape: f32[256,128], index: 0, kind: input, shape index: {}]   ;;  %s3271_s1 = inlined_call_operand.vmem [shape: f32[256,1], index: 1, kind: input, shape index: {}]   ;;  %s3272_s2 = inlined_call_operand.hbm [shape: bf16[4,128,128], index: 2, kind: input, shape index: {}]   ;;  %s3273_s3 = inlined_call_operand.vmem [shape: f32[4,1,128], index: 3, kind: input, shape index: {}]   ;;  %s3274_s4 = inlined_call_operand.hbm [shape: bf16[4,128,128], index: 4, kind: input, shape index: {}]   ;;  %s3275_s5 = inlined_call_operand.vmem [shape: f32[4,1,128], index: 5, kind: input, shape index: {}]   ;;  %s3276_s6 = inlined_call_operand.vmem [shape: f32[1,128], index: 6, kind: input, shape index: {}]   ;;  %s3277_s7 = inlined_call_operand.hbm [shape: f32[256,128], index: 7, kind: output, shape index: {}]  }
   0x1   :  { %13 = vsyncpa [#allocation6], 0 }
   0x2   :  { %14 = vsyncpa [#allocation4], 0 }
   0x3   :  { %16 = vsyncpa [#allocation4 + $0x1], 0  ;;  %s2991_s24 = smov 0   ;;  %s2993_s25 = smov 0  }
   0x4   :  { %s2995_s26 = smov 0   ;;  %s2997_s27 = smov 0  }
   0x5 LB: > { %s3012_s28 = sadd.s32 4294967295, %s2941_s27   ;;  %s2217_s29 = sadd.s32 4294967294, %s2941_s27   ;;  %s2941_s27 = sphi %s2997_s27, %s3291_s27   ;;  %s2937_s26 = sphi %s2995_s26, %s3290_s26   ;;  %s2933_s25 = sphi %s2993_s25, %s3289_s25   ;;  %s2929_s24 = sphi %s2991_s24, %s3288_s24  }
   0x6   : > { %s3016_s30 = sadd.s32 1, %s2941_s27   ;;  %s186_s8 = sadd.s32 1, %s2937_s26 }
   0x7   : > { %s183_s9 = ssub.s32 %s2941_s27, %s3016_s30  ;;  %p196_p0 = scmp.ne.s32.totalorder %s2937_s26, %s2933_s25 }
   0x8   : > { %p184_p1 = scmp.eq.s32.totalorder %s183_s9, 0  ;;  %p197_p2 = scmp.eq.s32.totalorder %s3012_s28, 1 }
   0x9   : > { %p202_p3 = scmp.ne.s32.totalorder %s2933_s25, %s2929_s24  ;;  %p203_p4 = scmp.eq.s32.totalorder %s2217_s29, 1 }
   0xa   : > { %s3027_s10 = scalar_select %p184_p1, %s2937_s26, %s186_s8  }
   0xb   : > { %p3029_p5 = por %p197_p2, %p196_p0  ;;  %p3033_p6 = por %p203_p4, %p202_p3 }
   0xc   : > { %p2218_p7 = scmp.ge.s32.totalorder %s2941_s27, 1  ;;  %p210_p8 = scmp.lt.s32.totalorder %s2941_s27, 3 }
   0xd   : > { %s3280_s12 = scalar_select %p3033_p6, 1, 0 }
   0xe   : > { %p3278_p9 = scmp.eq.s32.totalorder %s3012_s28, 0  ;;  %p3040_p10 = pnand %p2218_p7, %p210_p8 }
   0xf   : > { %s2943_s14 = smov [#allocation2]   ;;  %s2944_s17 = smov [#allocation5]  }
  0x10   : > { %s222_s15 = sshll.u32 %s2943_s14, 4  ;;  %p2700_p11 = pneg %p3040_p10  ;;  %s223_s15 = int_to_ptr.vmem [resolvable:$true] %s222_s15 }
  0x11   : > { %s238_s18 = sshll.u32 %s2944_s17, 4  ;;  %s2832_s19 = scalar_lea.vmem %s223_s15, 4096  ;;  %s239_s18 = int_to_ptr.vmem [resolvable:$true] %s238_s18 }
  0x12   : > { %p3048_p12 = pnand %p3278_p9, %p2700_p11  ;;  %p2833_p0 = scmp.ne.s32.totalorder %s223_s15, %s2832_s19 }
  0x13   : > { %p2840_p3 = scmp.lt.s32.totalorder %s223_s15, %s223_s15  ;;  %p2841_p4 = scmp.lt.s32.totalorder %s2832_s19, %s2832_s19 }
  0x14   : > { %p2823_p13 = pneg %p3048_p12 }
  0x15   : > { %p2842_p7 = por %p2841_p4, %p2840_p3 }
  0x16   : > { %p2835_p1 = pnand %p2833_p0, %p2823_p13 }
  0x18   : > { %p2836_p2 = pneg %p2835_p1 }
  0x1a   : > { %p2843_p8 = pnand %p2842_p7, %p2836_p2 }
  0x1c   : > { %2846 = shalt.err (!%p2843_p8)
}
  0x1d   : > { %s2945_s20 = smov 64   ;;  %s2946_s21 = smov 4  }
  0x1e   : > { %2703 = dma.hbm_to_vmem [thread:$0]  (!%p3048_p12), %s3272_s2, 4096, %s223_s15, [#allocation3], %s2945_s20, %s2945_s20, %s2946_s21  }
  0x1f   : > { %s2858_s29 = scalar_lea.vmem %s239_s18, 4096  ;;  %p2866_p9 = scmp.lt.s32.totalorder %s239_s18, %s239_s18 }
  0x20   : > { %p2859_p11 = scmp.ne.s32.totalorder %s239_s18, %s2858_s29  ;;  %p2867_p6 = scmp.lt.s32.totalorder %s2858_s29, %s2858_s29 }
  0x22   : > { %p2861_p0 = pnand %p2859_p11, %p2823_p13  ;;  %p2868_p3 = por %p2867_p6, %p2866_p9 }
  0x24   : > { %p2862_p1 = pneg %p2861_p0 }
  0x26   : > { %p2869_p2 = pnand %p2868_p3, %p2862_p1 }
  0x28   : > { %2872 = shalt.err (!%p2869_p2)
}
  0x29   : > { %2706 = dma.hbm_to_vmem [thread:$0]  (!%p3048_p12), %s3274_s4, 4096, %s239_s18, [#allocation6], %s2945_s20, %s2945_s20, %s2946_s21  }
  0x2a   : > { %278 = sbr.rel (%p3040_p10) target bundleno = 1789 (0x6fd), region = 48  ;;  %p3283_p4 = scmp.eq.s32.totalorder (!%p3040_p10), %s3012_s28, 0 }
  0x2f   : > { %2916 = dma.done.wait (%p3283_p4), [#allocation3], 4096   ;;  %p3284_p13 = pmov %p3283_p4 }
  0x30   : > { %p3285_p7 = pmov %p3283_p4 }
  0x31   : > { %2918 = vsyncadd (%p3284_p13), [#allocation3], 4294963200 }
  0x32   : > { %2920 = dma.done.wait (%p3285_p7), [#allocation6], 4096   ;;  %p3286_p6 = pmov %p3283_p4 }
  0x33   : > { %s2226_s14 = sshll.u32 %s3012_s28, 4  ;;  %v2757_v0 = vld [vmem:[#allocation2 + $0x38] sm:$0xff]   ;;  %v2758_v1 = vld [vmem:[#allocation2 + $0x30] sm:$0xff]   ;;  %v2759_v2 = vld [vmem:[#allocation2 + $0x28] sm:$0xff]   ;;  %v558_v45 = vlaneseq  ;;  %s316_s8 = sand.u32 1, %s2933_s25  }
  0x34   : > { %2922 = vsyncadd (%p3286_p6), [#allocation6], 4294963200  ;;  %p320_p9 = scmp.lt.s32.totalorder %s2226_s14, 31  ;;  %2434 = vmatprep.subr.bf16.mxu0 %v2757_v0  ;;  %v2760_v3 = vld [vmem:[#allocation2 + $0x20] sm:$0xff]   ;;  %v2761_v7 = vld [vmem:[#allocation2 + $0x18] sm:$0xff]   ;;  %s2225_s9 = sshll.u32 %s316_s8, 7 }
  0x35   : > { %2435 = vmatpush3.bf16.msra.mxu0 %v2757_v0  ;;  %v2765_v8 = vld [vmem:[#allocation2 + $0x78] sm:$0xff]   ;;  %v2766_v9 = vld [vmem:[#allocation2 + $0x70] sm:$0xff]   ;;  %v2767_v11 = vld [vmem:[#allocation2 + $0x68] sm:$0xff]   ;;  %v559_v48 = vshrl.u32 %v558_v45, 7  ;;  %s2948_s20 = smov [#allocation7]  }
  0x36   : > { %s3293_s14 = smov (!%p320_p9, %s2226_s14), 31  ;;  %2436 = vmatprep.subr.bf16.mxu0 %v2758_v1  ;;  %v2762_v10 = vld [vmem:[#allocation2 + $0x10] sm:$0xff]   ;;  %2466 = vmatprep.subr.bf16.mxu1 %v2765_v8  ;;  %v2763_v12 = vld [vmem:[#allocation2 + $0x8] sm:$0xff]   ;;  %v2768_v13 = vld [vmem:[#allocation2 + $0x60] sm:$0xff]   ;;  %s2877_s21 = sshll.u32 %s2948_s20, 4  ;;  %s2878_s21 = int_to_ptr.vmem [resolvable:$false] %s2877_s21 }
  0x37   : > { %s2227_s13 = sshll.u32 %s3293_s14, 3  ;;  %2467 = vmatpush3.bf16.msra.mxu1 %v2765_v8  ;;  %v2764_v14 = vld [vmem:[#allocation2] sm:$0xff]   ;;  %v2769_v36 = vld [vmem:[#allocation2 + $0x58] sm:$0xff]   ;;  %v2770_v37 = vld [vmem:[#allocation2 + $0x50] sm:$0xff]   ;;  %v3110_v50 = vsub.s32 0, %v559_v48  ;;  %s3195_s14 = scalar_lea.vmem [#allocation7], %s2225_s9 }
  0x38   : > { %s3089_s17 = scalar_lea.vmem %s3270_s0, %s2227_s13  ;;  %2468 = vmatprep.subr.bf16.mxu1 %v2766_v9  ;;  %v2771_v38 = vld [vmem:[#allocation2 + $0x48] sm:$0xff]   ;;  %v2772_v39 = vld [vmem:[#allocation2 + $0x40] sm:$0xff]   ;;  %v2773_v40 = vld [vmem:[#allocation2 + $0xb8] sm:$0xff]   ;;  %s3122_s29 = scalar_lea.vmem %s3271_s1, %s2227_s13 }
  0x39   : > { %2437 = vmatpush3.bf16.msra.mxu0 %v2758_v1  ;;  %v336_v4 = vld [vmem:[%s3089_s17] sm:$0xff]  ;;  %v337_v5 = vld [vmem:[%s3089_s17 + $0x8] sm:$0xff]  ;;  %v338_v15 = vld [vmem:[%s3089_s17 + $0x10] sm:$0xff]  ;;  %s2305_s13 = sshll.u32 %s3012_s28, 11  ;;  %s2121_s15 = sshll.u32 %s3195_s14, 4  ;;  %s3222_s15 = int_to_ptr.vmem [resolvable:$true] %s2121_s15 }
  0x3a   : > { %2438 = vmatprep.subr.bf16.mxu0 %v2759_v2  ;;  %v352_v6 = vpack.c.bf16 %v337_v5, %v336_v4  ;;  %v339_v16 = vld [vmem:[%s3089_s17 + $0x18] sm:$0xff]  ;;  %v340_v17 = vld [vmem:[%s3089_s17 + $0x20] sm:$0xff]  ;;  %v341_v18 = vld [vmem:[%s3089_s17 + $0x28] sm:$0xff]  ;;  %s3220_s18 = scalar_lea.hbm %s3277_s7, %s2305_s13  ;;  %s3230_s28 = scalar_lea.sflag [#allocation4], %s316_s8 }
  0x3b   : > { %2469 = vmatpush3.bf16.msra.mxu1 %v2766_v9  ;;  %v353_v19 = vpack.c.bf16 %v339_v16, %v338_v15  ;;  %v354_v20 = vpack.c.bf16 %v341_v18, %v340_v17  ;;  %v342_v21 = vld [vmem:[%s3089_s17 + $0x30] sm:$0xff]  ;;  %v343_v22 = vld [vmem:[%s3089_s17 + $0x38] sm:$0xff]  ;;  %v344_v23 = vld [vmem:[%s3089_s17 + $0x40] sm:$0xff]  ;;  %s2873_s19 = scalar_lea.vmem %s3222_s15, 2048  ;;  %s2879_s22 = scalar_lea.vmem %s2878_s21, 4096 }
  0x3c   : > { %2450 = vmatprep.mubr.bf16.mxu0 %v352_v6  ;;  %2470 = vmatprep.subr.bf16.mxu1 %v2767_v11  ;;  %v345_v24 = vld [vmem:[%s3089_s17 + $0x48] sm:$0xff]  ;;  %v355_v25 = vpack.c.bf16 %v343_v22, %v342_v21  ;;  %v346_v27 = vld [vmem:[%s3089_s17 + $0x50] sm:$0xff]  ;;  %v347_v28 = vld [vmem:[%s3089_s17 + $0x58] sm:$0xff]  ;;  %p2874_p10 = scmp.ne.s32.totalorder %s3222_s15, %s2873_s19  ;;  %p2880_p11 = scmp.lt.s32.totalorder %s3222_s15, %s2878_s21 }
  0x3d   : > { %2439 = vmatpush3.bf16.msra.mxu0 %v2759_v2  ;;  %v356_v26 = vpack.c.bf16 %v345_v24, %v344_v23  ;;  %v348_v29 = vld [vmem:[%s3089_s17 + $0x60] sm:$0xff]  ;;  %v349_v30 = vld [vmem:[%s3089_s17 + $0x68] sm:$0xff]  ;;  %v357_v31 = vpack.c.bf16 %v347_v28, %v346_v27  ;;  %v350_v33 = vld [vmem:[%s3089_s17 + $0x70] sm:$0xff]  ;;  %p2881_p0 = scmp.lt.s32.totalorder %s2879_s22, %s2873_s19 }
  0x3e   : > { %2440 = vmatprep.subr.bf16.mxu0 %v2760_v3  ;;  %v358_v32 = vpack.c.bf16 %v349_v30, %v348_v29  ;;  %v351_v34 = vld [vmem:[%s3089_s17 + $0x78] sm:$0xff]  ;;  %v2774_v41 = vld [vmem:[#allocation2 + $0xb0] sm:$0xff]   ;;  %v2775_v42 = vld [vmem:[#allocation2 + $0xa8] sm:$0xff]   ;;  %p2875_p12 = pnand %p2874_p10, %p3029_p5 }
  0x3f   : > { %2471 = vmatpush3.bf16.msra.mxu1 %v2767_v11  ;;  %v359_v35 = vpack.c.bf16 %v351_v34, %v350_v33  ;;  %v2776_v43 = vld [vmem:[#allocation2 + $0xa0] sm:$0xff]   ;;  %v2777_v44 = vld [vmem:[#allocation2 + $0x98] sm:$0xff]   ;;  %p2882_p1 = por %p2881_p0, %p2880_p11 }
  0x40   : > { %2472 = vmatprep.subr.bf16.mxu1 %v2768_v13  ;;  %v400_v46 = vld [vmem:[%s3273_s3] sm:$0x1]  ;;  %p2876_p8 = pneg %p2875_p12 }
  0x41   : > { %2441 = vmatpush3.bf16.msra.mxu0 %v2760_v3  ;;  %v554_v47 = vpack.c.bf16 %v400_v46, %v400_v46 }
  0x42   : > { %2442 = vmatprep.subr.bf16.mxu0 %v2761_v7  ;;  %p2883_p3 = pnand %p2882_p1, %p2876_p8 }
  0x43   : > { %2473 = vmatpush3.bf16.msra.mxu1 %v2768_v13  ;;  %v556_v49 = vpack.i.b16 %v554_v47, %v554_v47 }
  0x44   : > { %2474 = vmatprep.subr.bf16.mxu1 %v2769_v36 }
  0x45   : > { %2443 = vmatpush3.bf16.msra.mxu0 %v2761_v7  ;;  %v561_v53 = vrot.slane %v556_v49, %v3110_v50 }
  0x46   : > { %2444 = vmatprep.subr.bf16.mxu0 %v2762_v10 }
  0x47   : > { %2475 = vmatpush3.bf16.msra.mxu1 %v2769_v36  ;;  %v2778_v36 = vld [vmem:[#allocation2 + $0x90] sm:$0xff]  }
  0x48   : > { %2476 = vmatprep.subr.bf16.mxu1 %v2770_v37 }
  0x49   : > { %2445 = vmatpush3.bf16.msra.mxu0 %v2762_v10 }
  0x4a   : > { %2446 = vmatprep.subr.bf16.mxu0 %v2763_v12 }
  0x4b   : > { %2477 = vmatpush3.bf16.msra.mxu1 %v2770_v37  ;;  %v2779_v37 = vld [vmem:[#allocation2 + $0x88] sm:$0xff]  }
  0x4c   : > { %2478 = vmatprep.subr.bf16.mxu1 %v2771_v38 }
  0x4d   : > { %2447 = vmatpush3.bf16.msra.mxu0 %v2763_v12 }
  0x4e   : > { %2448 = vmatprep.subr.bf16.mxu0 %v2764_v14 }
  0x4f   : > { %2479 = vmatpush3.bf16.msra.mxu1 %v2771_v38  ;;  %v2780_v38 = vld [vmem:[#allocation2 + $0x80] sm:$0xff]  }
  0x50   : > { %2480 = vmatprep.subr.bf16.mxu1 %v2772_v39 }
  0x51   : > { %2449 = vmatpush3.bf16.msra.mxu0 %v2764_v14 }
  0x52   : > { %2498 = vmatprep.subr.bf16.mxu0 %v2773_v40 }
  0x53   : > { %2481 = vmatpush3.bf16.msra.mxu1 %v2772_v39  ;;  %v2781_v39 = vld [vmem:[#allocation2 + $0xf8] sm:$0xff]  }
  0x54   : > { %2451 = vmatmul.mubr.bf16.vlgmr.msra.gmra.mxu0 %v353_v19  ;;  %2530 = vmatprep.subr.bf16.mxu1 %v2781_v39 }
  0x55   : > { %2454 = vmatprep.mubr.bf16.mxu0 %v354_v20  ;;  %2499 = vmatpush3.bf16.msra.mxu0 %v2773_v40  ;;  %v2782_v40 = vld [vmem:[#allocation2 + $0xf0] sm:$0xff]  }
  0x56   : > { %2500 = vmatprep.subr.bf16.mxu0 %v2774_v41 }
  0x59   : > { %2501 = vmatpush3.bf16.msra.mxu0 %v2774_v41  ;;  %v2783_v41 = vld [vmem:[#allocation2 + $0xe8] sm:$0xff]  }
  0x5a   : > { %2502 = vmatprep.subr.bf16.mxu0 %v2775_v42 }
  0x5c   : > { %2455 = vmatmul.mubr.bf16.gmra.mxu0 %v355_v25 }
  0x5d   : > { %2458 = vmatprep.mubr.bf16.mxu0 %v356_v26  ;;  %2503 = vmatpush3.bf16.msra.mxu0 %v2775_v42  ;;  %v2784_v42 = vld [vmem:[#allocation2 + $0xe0] sm:$0xff]  }
  0x5e   : > { %2504 = vmatprep.subr.bf16.mxu0 %v2776_v43 }
  0x61   : > { %2505 = vmatpush3.bf16.msra.mxu0 %v2776_v43  ;;  %v2785_v43 = vld [vmem:[#allocation2 + $0xd8] sm:$0xff]  }
  0x62   : > { %2506 = vmatprep.subr.bf16.mxu0 %v2777_v44 }
  0x64   : > { %2459 = vmatmul.mubr.bf16.gmra.mxu0 %v357_v31 }
  0x65   : > { %2462 = vmatprep.mubr.bf16.mxu0 %v358_v32  ;;  %2507 = vmatpush3.bf16.msra.mxu0 %v2777_v44  ;;  %v2238_v44 = vld [vmem:[%s3273_s3 + $0x1] sm:$0x1] }
  0x66   : > { %2508 = vmatprep.subr.bf16.mxu0 %v2778_v36  ;;  %v758_v45 = vpack.c.bf16 %v2238_v44, %v2238_v44  ;;  %v364_v44 = vld [vmem:[%s3122_s29 + $0x20] sm:$0xff] }
  0x68   : > { %v760_v46 = vpack.i.b16 %v758_v45, %v758_v45  ;;  %v365_v45 = vld [vmem:[%s3122_s29 + $0x28] sm:$0xff] }
  0x69   : > { %2509 = vmatpush3.bf16.msra.mxu0 %v2778_v36  ;;  %v2789_v36 = vld [vmem:[#allocation5 + $0x38] sm:$0xff]  }
  0x6a   : > { %2510 = vmatprep.subr.bf16.mxu0 %v2779_v37  ;;  %v765_v49 = vrot.slane %v760_v46, %v3110_v50  ;;  %v378_v46 = vpack.c.bf16 %v365_v45, %v364_v44 }
  0x6c   : > { %2463 = vmatmul.mubr.bf16.gmra.mxu0 %v359_v35 }
  0x6d   : > { %2511 = vmatpush3.bf16.msra.mxu0 %v2779_v37  ;;  %v2790_v37 = vld [vmem:[#allocation5 + $0x30] sm:$0xff]  }
  0x6e   : > { %2512 = vmatprep.subr.bf16.mxu0 %v2780_v38 }
  0x71   : > { %2513 = vmatpush3.bf16.msra.mxu0 %v2780_v38  ;;  %v2947_v38 = vmov 0  }
  0x72   : > { %2755 = vset.pattern.permute.xlu0 %v2947_v38  ;;  %2756 = vset.pattern.permute.xlu1 %v2947_v38 }
  0x73   : > { %2562 = vmatprep.subr.bf16.mxu0 %v2789_v36  ;;  %1210 = vperm.xlu1 %2756, %v378_v46  }
 0x114   : > { %v2452_v51 = vpop.f32.mrf.mxu0 }
 0x116   : > { %v483_v52 = vpop.f32.mrf.mxu0 }
 0x118   : > { %v2453_v54 = vpop.f32.mrf.mxu0 }
 0x119   : > { %v547_v55 = vpack.c.bf16 %v2453_v54, %v2452_v51 }
 0x11a   : > { %v486_v56 = vpop.f32.mrf.mxu0 }
 0x11b   : > { %v563_v57 = vadd.bf16 %v561_v53, %v547_v55  ;;  %v546_v58 = vpack.c.bf16 %v486_v56, %v483_v52 }
 0x11c   : > { %v2456_v59 = vpop.f32.mrf.mxu0 }
 0x11d   : > { %v562_v60 = vadd.bf16 %v561_v53, %v546_v58  ;;  %v571_v61 = vmul.bf16 1045249613, %v563_v57 }
 0x11e   : > { %v499_v62 = vpop.f32.mrf.mxu0 }
 0x11f   : > { %v570_v63 = vmul.bf16 1045249613, %v562_v60  ;;  %v579_v4 = vmax.bf16 %v571_v61, %v563_v57 }
 0x120   : > { %v2457_v0 = vpop.f32.mrf.mxu0 }
 0x121   : > { %v549_v1 = vpack.c.bf16 %v2457_v0, %v2456_v59  ;;  %v578_v2 = vmax.bf16 %v570_v63, %v562_v60 }
 0x122   : > { %v502_v3 = vpop.f32.mrf.mxu0 }
 0x123   : > { %v565_v5 = vadd.bf16 %v561_v53, %v549_v1  ;;  %v548_v6 = vpack.c.bf16 %v502_v3, %v499_v62  ;;  %2482 = vmatprep.mubr.bf16.mxu1 %v578_v2 }
 0x124   : > { %v2460_v7 = vpop.f32.mrf.mxu0  ;;  %2483 = vmatmul.mubr.bf16.vlgmr.msra.gmra.mxu1 %v579_v4 }
 0x125   : > { %v564_v8 = vadd.bf16 %v561_v53, %v548_v6  ;;  %v573_v9 = vmul.bf16 1045249613, %v565_v5  ;;  %2531 = vmatpush3.bf16.msra.mxu1 %v2781_v39  ;;  %v360_v39 = vld [vmem:[%s3122_s29] sm:$0xff] }
 0x126   : > { %v515_v10 = vpop.f32.mrf.mxu0  ;;  %2532 = vmatprep.subr.bf16.mxu1 %v2782_v40 }
 0x127   : > { %v572_v11 = vmul.bf16 1045249613, %v564_v8  ;;  %v581_v16 = vmax.bf16 %v573_v9, %v565_v5 }
 0x128   : > { %v2461_v12 = vpop.f32.mrf.mxu0 }
 0x129   : > { %v551_v13 = vpack.c.bf16 %v2461_v12, %v2460_v7  ;;  %v580_v14 = vmax.bf16 %v572_v11, %v564_v8  ;;  %2533 = vmatpush3.bf16.msra.mxu1 %v2782_v40  ;;  %v361_v40 = vld [vmem:[%s3122_s29 + $0x8] sm:$0xff] }
 0x12a   : > { %v518_v15 = vpop.f32.mrf.mxu0  ;;  %2534 = vmatprep.subr.bf16.mxu1 %v2783_v41 }
 0x12b   : > { %v567_v17 = vadd.bf16 %v561_v53, %v551_v13  ;;  %v550_v18 = vpack.c.bf16 %v518_v15, %v515_v10  ;;  %2486 = vmatprep.mubr.bf16.mxu1 %v580_v14 }
 0x12c   : > { %v2464_v19 = vpop.f32.mrf.mxu0  ;;  %2487 = vmatmul.mubr.bf16.gmra.mxu1 %v581_v16 }
 0x12d   : > { %v566_v20 = vadd.bf16 %v561_v53, %v550_v18  ;;  %v575_v21 = vmul.bf16 1045249613, %v567_v17  ;;  %2535 = vmatpush3.bf16.msra.mxu1 %v2783_v41  ;;  %v362_v41 = vld [vmem:[%s3122_s29 + $0x10] sm:$0xff] }
 0x12e   : > { %v531_v22 = vpop.f32.mrf.mxu0  ;;  %2536 = vmatprep.subr.bf16.mxu1 %v2784_v42 }
 0x12f   : > { %v574_v23 = vmul.bf16 1045249613, %v566_v20  ;;  %v583_v28 = vmax.bf16 %v575_v21, %v567_v17 }
 0x130   : > { %v2465_v24 = vpop.f32.mrf.mxu0 }
 0x131   : > { %v553_v25 = vpack.c.bf16 %v2465_v24, %v2464_v19  ;;  %v582_v26 = vmax.bf16 %v574_v23, %v566_v20  ;;  %2537 = vmatpush3.bf16.msra.mxu1 %v2784_v42  ;;  %v376_v42 = vpack.c.bf16 %v361_v40, %v360_v39 }
 0x132   : > { %v534_v27 = vpop.f32.mrf.mxu0  ;;  %2538 = vmatprep.subr.bf16.mxu1 %v2785_v43 }
 0x133   : > { %v569_v29 = vadd.bf16 %v561_v53, %v553_v25  ;;  %v552_v30 = vpack.c.bf16 %v534_v27, %v531_v22  ;;  %2490 = vmatprep.mubr.bf16.mxu1 %v582_v26  ;;  %1200 = vperm.xlu0 %2755, %v376_v42  }
 0x134   : > { %2491 = vmatmul.mubr.bf16.gmra.mxu1 %v583_v28 }
 0x135   : > { %v568_v31 = vadd.bf16 %v561_v53, %v552_v30  ;;  %v577_v32 = vmul.bf16 1045249613, %v569_v29  ;;  %2539 = vmatpush3.bf16.msra.mxu1 %v2785_v43  ;;  %v363_v43 = vld [vmem:[%s3122_s29 + $0x18] sm:$0xff] }
 0x137   : > { %v576_v33 = vmul.bf16 1045249613, %v568_v31  ;;  %v585_v35 = vmax.bf16 %v577_v32, %v569_v29 }
 0x139   : > { %v584_v34 = vmax.bf16 %v576_v33, %v568_v31  ;;  %v2786_v33 = vld [vmem:[#allocation2 + $0xd0] sm:$0xff]  }
 0x13a   : > { %2540 = vmatprep.subr.bf16.mxu1 %v2786_v33 }
 0x13b   : > { %2494 = vmatprep.mubr.bf16.mxu1 %v584_v34  ;;  %2541 = vmatpush3.bf16.msra.mxu1 %v2786_v33  ;;  %v2787_v34 = vld [vmem:[#allocation2 + $0xc8] sm:$0xff]  }
 0x13c   : > { %2495 = vmatmul.mubr.bf16.gmra.mxu1 %v585_v35  ;;  %2542 = vmatprep.subr.bf16.mxu1 %v2787_v34  ;;  %v2788_v35 = vld [vmem:[#allocation2 + $0xc0] sm:$0xff]  }
 0x13f   : > { %2543 = vmatpush3.bf16.msra.mxu1 %v2787_v34 }
 0x140   : > { %2544 = vmatprep.subr.bf16.mxu1 %v2788_v35 }
 0x143   : > { %2545 = vmatpush3.bf16.msra.mxu1 %v2788_v35 }
 0x1e4   : > { %v2484_v47 = vpop.f32.mrf.mxu1 }
 0x1e6   : > { %v687_v48 = vpop.f32.mrf.mxu1 }
 0x1e8   : > { %v2485_v51 = vpop.f32.mrf.mxu1 }
 0x1e9   : > { %v751_v52 = vpack.c.bf16 %v2485_v51, %v2484_v47  ;;  %v366_v47 = vld [vmem:[%s3122_s29 + $0x30] sm:$0xff]  ;;  %v2791_v51 = vld [vmem:[#allocation5 + $0x28] sm:$0xff]  }
 0x1ea   : > { %v690_v53 = vpop.f32.mrf.mxu1 }
 0x1eb   : > { %v767_v54 = vadd.bf16 %v765_v49, %v751_v52  ;;  %v750_v55 = vpack.c.bf16 %v690_v53, %v687_v48  ;;  %v377_v48 = vpack.c.bf16 %v363_v43, %v362_v41  ;;  %v368_v52 = vld [vmem:[%s3122_s29 + $0x40] sm:$0xff]  ;;  %v369_v53 = vld [vmem:[%s3122_s29 + $0x48] sm:$0xff] }
 0x1ec   : > { %v2488_v56 = vpop.f32.mrf.mxu1 }
 0x1ed   : > { %v766_v57 = vadd.bf16 %v765_v49, %v750_v55  ;;  %v775_v58 = vmul.bf16 1045249613, %v767_v54  ;;  %v370_v55 = vld [vmem:[%s3122_s29 + $0x50] sm:$0xff]  ;;  %1205 = vperm.xlu0 %2755, %v377_v48  }
 0x1ee   : > { %v703_v59 = vpop.f32.mrf.mxu1 }
 0x1ef   : > { %v774_v60 = vmul.bf16 1045249613, %v766_v57  ;;  %v783_v0 = vmax.bf16 %v775_v58, %v767_v54  ;;  %v2792_v58 = vld [vmem:[#allocation5 + $0x20] sm:$0xff]  }
 0x1f0   : > { %v2489_v61 = vpop.f32.mrf.mxu1 }
 0x1f1   : > { %v753_v62 = vpack.c.bf16 %v2489_v61, %v2488_v56  ;;  %v782_v63 = vmax.bf16 %v774_v60, %v766_v57  ;;  %v371_v56 = vld [vmem:[%s3122_s29 + $0x58] sm:$0xff]  ;;  %v380_v57 = vpack.c.bf16 %v369_v53, %v368_v52  ;;  %v373_v60 = vld [vmem:[%s3122_s29 + $0x68] sm:$0xff] }
 0x1f2   : > { %v706_v1 = vpop.f32.mrf.mxu1  ;;  %v381_v61 = vpack.c.bf16 %v371_v56, %v370_v55  ;;  %v2793_v55 = vld [vmem:[#allocation5 + $0x18] sm:$0xff]   ;;  %v2794_v56 = vld [vmem:[#allocation5 + $0x10] sm:$0xff]  }
 0x1f3   : > { %v769_v2 = vadd.bf16 %v765_v49, %v753_v62  ;;  %v752_v3 = vpack.c.bf16 %v706_v1, %v703_v59  ;;  %2514 = vmatprep.mubr.bf16.mxu0 %v782_v63  ;;  %v372_v59 = vld [vmem:[%s3122_s29 + $0x60] sm:$0xff]  ;;  %v374_v62 = vld [vmem:[%s3122_s29 + $0x70] sm:$0xff]  ;;  %v375_v63 = vld [vmem:[%s3122_s29 + $0x78] sm:$0xff]  ;;  %1220 = vperm.xlu0 %2755, %v380_v57  }
 0x1f4   : > { %v2492_v4 = vpop.f32.mrf.mxu1  ;;  %2515 = vmatmul.mubr.bf16.vlgmr.msra.gmra.mxu0 %v783_v0  ;;  %v382_v0 = vpack.c.bf16 %v373_v60, %v372_v59  ;;  %v383_v1 = vpack.c.bf16 %v375_v63, %v374_v62  ;;  %v2795_v57 = vld [vmem:[#allocation5 + $0x8] sm:$0xff]   ;;  %v2797_v59 = vld [vmem:[#allocation5 + $0x78] sm:$0xff]   ;;  %v2798_v60 = vld [vmem:[#allocation5 + $0x70] sm:$0xff]  }
 0x1f5   : > { %v768_v5 = vadd.bf16 %v765_v49, %v752_v3  ;;  %v777_v6 = vmul.bf16 1045249613, %v769_v2  ;;  %2563 = vmatpush3.bf16.msra.mxu0 %v2789_v36  ;;  %2594 = vmatprep.subr.bf16.mxu1 %v2797_v59  ;;  %v2800_v62 = vld [vmem:[#allocation5 + $0x60] sm:$0xff]   ;;  %v2801_v63 = vld [vmem:[#allocation5 + $0x58] sm:$0xff]  }
 0x1f6   : > { %v719_v7 = vpop.f32.mrf.mxu1  ;;  %2564 = vmatprep.subr.bf16.mxu0 %v2790_v37 }
 0x1f7   : > { %v776_v8 = vmul.bf16 1045249613, %v768_v5  ;;  %v785_v13 = vmax.bf16 %v777_v6, %v769_v2  ;;  %1230 = vperm.xlu0 %2755, %v382_v0   ;;  %v2247_v2 = vld [vmem:[%s3273_s3 + $0x2] sm:$0x1]  ;;  %v2256_v0 = vld [vmem:[%s3273_s3 + $0x3] sm:$0x1] }
 0x1f8   : > { %v2493_v9 = vpop.f32.mrf.mxu1  ;;  %v962_v3 = vpack.c.bf16 %v2247_v2, %v2247_v2  ;;  %v334_v2 = vld [vmem:[%s3276_s6] sm:$0x1] }
 0x1f9   : > { %v755_v10 = vpack.c.bf16 %v2493_v9, %v2492_v4  ;;  %v784_v11 = vmax.bf16 %v776_v8, %v768_v5  ;;  %2565 = vmatpush3.bf16.msra.mxu0 %v2790_v37 }
 0x1fa   : > { %v722_v12 = vpop.f32.mrf.mxu1  ;;  %2566 = vmatprep.subr.bf16.mxu0 %v2791_v51  ;;  %v964_v4 = vpack.i.b16 %v962_v3, %v962_v3 }
 0x1fb   : > { %v771_v14 = vadd.bf16 %v765_v49, %v755_v10  ;;  %v754_v15 = vpack.c.bf16 %v722_v12, %v719_v7  ;;  %2518 = vmatprep.mubr.bf16.mxu0 %v784_v11 }
 0x1fc   : > { %v2496_v16 = vpop.f32.mrf.mxu1  ;;  %2519 = vmatmul.mubr.bf16.gmra.mxu0 %v785_v13  ;;  %v969_v7 = vrot.slane %v964_v4, %v3110_v50  ;;  %v335_v4 = vpack.c.bf16 %v334_v2, %v334_v2 }
 0x1fd   : > { %v770_v17 = vadd.bf16 %v765_v49, %v754_v15  ;;  %v779_v18 = vmul.bf16 1045249613, %v771_v14  ;;  %2567 = vmatpush3.bf16.msra.mxu0 %v2791_v51 }
 0x1fe   : > { %v735_v19 = vpop.f32.mrf.mxu1  ;;  %2568 = vmatprep.subr.bf16.mxu0 %v2792_v58 }
 0x1ff   : > { %v778_v20 = vmul.bf16 1045249613, %v770_v17  ;;  %v787_v25 = vmax.bf16 %v779_v18, %v771_v14 }
 0x200   : > { %v2497_v21 = vpop.f32.mrf.mxu1 }
 0x201   : > { %v757_v22 = vpack.c.bf16 %v2497_v21, %v2496_v16  ;;  %v786_v23 = vmax.bf16 %v778_v20, %v770_v17  ;;  %2569 = vmatpush3.bf16.msra.mxu0 %v2792_v58  ;;  %v2796_v58 = vld [vmem:[#allocation5] sm:$0xff]  }
 0x202   : > { %v738_v24 = vpop.f32.mrf.mxu1  ;;  %2570 = vmatprep.subr.bf16.mxu0 %v2793_v55 }
 0x203   : > { %v773_v26 = vadd.bf16 %v765_v49, %v757_v22  ;;  %v756_v27 = vpack.c.bf16 %v738_v24, %v735_v19  ;;  %2522 = vmatprep.mubr.bf16.mxu0 %v786_v23 }
 0x204   : > { %2523 = vmatmul.mubr.bf16.gmra.mxu0 %v787_v25 }
 0x205   : > { %v772_v28 = vadd.bf16 %v765_v49, %v756_v27  ;;  %v781_v29 = vmul.bf16 1045249613, %v773_v26  ;;  %v367_v49 = vld [vmem:[%s3122_s29 + $0x38] sm:$0xff]  ;;  %2571 = vmatpush3.bf16.msra.mxu0 %v2793_v55 }
 0x206   : > { %v379_v54 = vpack.c.bf16 %v367_v49, %v366_v47  ;;  %2572 = vmatprep.subr.bf16.mxu0 %v2794_v56 }
 0x207   : > { %v780_v30 = vmul.bf16 1045249613, %v772_v28  ;;  %v789_v32 = vmax.bf16 %v781_v29, %v773_v26 }
 0x208   : > { %1215 = vperm.xlu1 %2756, %v379_v54  }
 0x209   : > { %v788_v31 = vmax.bf16 %v780_v30, %v772_v28  ;;  %2573 = vmatpush3.bf16.msra.mxu0 %v2794_v56 }
 0x20a   : > { %2574 = vmatprep.subr.bf16.mxu0 %v2795_v57 }
 0x20b   : > { %2526 = vmatprep.mubr.bf16.mxu0 %v788_v31 }
 0x20c   : > { %2527 = vmatmul.mubr.bf16.gmra.mxu0 %v789_v32  ;;  %1225 = vperm.xlu1 %2756, %v381_v61   ;;  %v2799_v61 = vld [vmem:[#allocation5 + $0x68] sm:$0xff]  }
 0x20d   : > { %2575 = vmatpush3.bf16.msra.mxu0 %v2795_v57 }
 0x20e   : > { %2576 = vmatprep.subr.bf16.mxu0 %v2796_v58 }
 0x210   : > { %1235 = vperm.xlu1 %2756, %v383_v1   ;;  %v1166_v1 = vpack.c.bf16 %v2256_v0, %v2256_v0 }
 0x211   : > { %2577 = vmatpush3.bf16.msra.mxu0 %v2796_v58 }
 0x212   : > { %v1168_v3 = vpack.i.b16 %v1166_v1, %v1166_v1 }
 0x2b4   : > { %v2516_v5 = vpop.f32.mrf.mxu0 }
 0x2b6   : > { %v891_v6 = vpop.f32.mrf.mxu0 }
 0x2b8   : > { %v2517_v8 = vpop.f32.mrf.mxu0 }
 0x2b9   : > { %v955_v9 = vpack.c.bf16 %v2517_v8, %v2516_v5  ;;  %v1239_v8 = vpack.i.b16 %v335_v4, %v335_v4 }
 0x2ba   : > { %v894_v10 = vpop.f32.mrf.mxu0 }
 0x2bb   : > { %v971_v11 = vadd.bf16 %v969_v7, %v955_v9  ;;  %v954_v12 = vpack.c.bf16 %v894_v10, %v891_v6  ;;  %v1201_v10 = vpop.permute.xlu0 %1200 }
 0x2bc   : > { %v2520_v13 = vpop.f32.mrf.mxu0 }
 0x2bd   : > { %v970_v14 = vadd.bf16 %v969_v7, %v954_v12  ;;  %v979_v15 = vmul.bf16 1045249613, %v971_v11 }
 0x2be   : > { %v907_v16 = vpop.f32.mrf.mxu0 }
 0x2bf   : > { %v978_v17 = vmul.bf16 1045249613, %v970_v14  ;;  %v987_v21 = vmax.bf16 %v979_v15, %v971_v11  ;;  %v3155_v15 = vrot.slane %v1239_v8, %v3110_v50 }
 0x2c0   : > { %v2521_v18 = vpop.f32.mrf.mxu0 }
 0x2c1   : > { %v957_v19 = vpack.c.bf16 %v2521_v18, %v2520_v13  ;;  %v986_v20 = vmax.bf16 %v978_v17, %v970_v14 }
 0x2c2   : > { %v910_v22 = vpop.f32.mrf.mxu0 }
 0x2c3   : > { %v973_v23 = vadd.bf16 %v969_v7, %v957_v19  ;;  %v956_v24 = vpack.c.bf16 %v910_v22, %v907_v16  ;;  %2546 = vmatprep.mubr.bf16.mxu1 %v986_v20  ;;  %v1206_v20 = vpop.permute.xlu0 %1205 }
 0x2c4   : > { %v2524_v25 = vpop.f32.mrf.mxu0  ;;  %2547 = vmatmul.mubr.bf16.vlgmr.msra.gmra.mxu1 %v987_v21  ;;  %v1246_v22 = vmul.bf16 %v3155_v15, %v1206_v20  ;;  %v2803_v20 = vld [vmem:[#allocation5 + $0x48] sm:$0xff]  }
 0x2c5   : > { %v972_v26 = vadd.bf16 %v969_v7, %v956_v24  ;;  %v981_v27 = vmul.bf16 1045249613, %v973_v23  ;;  %2595 = vmatpush3.bf16.msra.mxu1 %v2797_v59 }
 0x2c6   : > { %v923_v28 = vpop.f32.mrf.mxu0  ;;  %2596 = vmatprep.subr.bf16.mxu1 %v2798_v60 }
 0x2c7   : > { %v980_v29 = vmul.bf16 1045249613, %v972_v26  ;;  %v989_v34 = vmax.bf16 %v981_v27, %v973_v23  ;;  %v1221_v57 = vpop.permute.xlu0 %1220 }
 0x2c8   : > { %v2525_v30 = vpop.f32.mrf.mxu0 }
 0x2c9   : > { %v959_v31 = vpack.c.bf16 %v2525_v30, %v2524_v25  ;;  %v988_v32 = vmax.bf16 %v980_v29, %v972_v26  ;;  %2597 = vmatpush3.bf16.msra.mxu1 %v2798_v60  ;;  %v1245_v25 = vmul.bf16 %v3155_v15, %v1201_v10  ;;  %v1211_v26 = vpop.permute.xlu1 %1210  ;;  %v1249_v60 = vmul.bf16 %v3155_v15, %v1221_v57 }
 0x2ca   : > { %v926_v33 = vpop.f32.mrf.mxu0  ;;  %2598 = vmatprep.subr.bf16.mxu1 %v2799_v61 }
 0x2cb   : > { %v975_v35 = vadd.bf16 %v969_v7, %v959_v31  ;;  %v958_v36 = vpack.c.bf16 %v926_v33, %v923_v28  ;;  %2550 = vmatprep.mubr.bf16.mxu1 %v988_v32 }
 0x2cc   : > { %v2528_v37 = vpop.f32.mrf.mxu0  ;;  %2551 = vmatmul.mubr.bf16.gmra.mxu1 %v989_v34 }
 0x2cd   : > { %v974_v38 = vadd.bf16 %v969_v7, %v958_v36  ;;  %v983_v39 = vmul.bf16 1045249613, %v975_v35  ;;  %2599 = vmatpush3.bf16.msra.mxu1 %v2799_v61 }
 0x2ce   : > { %v939_v40 = vpop.f32.mrf.mxu0  ;;  %2600 = vmatprep.subr.bf16.mxu1 %v2800_v62 }
 0x2cf   : > { %v982_v41 = vmul.bf16 1045249613, %v974_v38  ;;  %v991_v46 = vmax.bf16 %v983_v39, %v975_v35 }
 0x2d0   : > { %v2529_v42 = vpop.f32.mrf.mxu0 }
 0x2d1   : > { %v961_v43 = vpack.c.bf16 %v2529_v42, %v2528_v37  ;;  %v990_v44 = vmax.bf16 %v982_v41, %v974_v38  ;;  %2601 = vmatpush3.bf16.msra.mxu1 %v2800_v62  ;;  %v1216_v38 = vpop.permute.xlu1 %1215 }
 0x2d2   : > { %v942_v45 = vpop.f32.mrf.mxu0  ;;  %2602 = vmatprep.subr.bf16.mxu1 %v2801_v63 }
 0x2d3   : > { %v977_v47 = vadd.bf16 %v969_v7, %v961_v43  ;;  %v960_v48 = vpack.c.bf16 %v942_v45, %v939_v40  ;;  %2554 = vmatprep.mubr.bf16.mxu1 %v990_v44  ;;  %v1248_v40 = vmul.bf16 %v3155_v15, %v1216_v38  ;;  %v1247_v43 = vmul.bf16 %v3155_v15, %v1211_v26 }
 0x2d4   : > { %2555 = vmatmul.mubr.bf16.gmra.mxu1 %v991_v46 }
 0x2d5   : > { %v976_v49 = vadd.bf16 %v969_v7, %v960_v48  ;;  %v985_v51 = vmul.bf16 1045249613, %v977_v47  ;;  %2603 = vmatpush3.bf16.msra.mxu1 %v2801_v63  ;;  %v3151_v7 = vrot.slane %v1168_v3, %v3110_v50  ;;  %v1226_v61 = vpop.permute.xlu1 %1225 }
 0x2d6   : > { %v1250_v0 = vmul.bf16 %v3155_v15, %v1226_v61 }
 0x2d7   : > { %v984_v52 = vmul.bf16 1045249613, %v976_v49  ;;  %v993_v54 = vmax.bf16 %v985_v51, %v977_v47 }
 0x2d9   : > { %v992_v53 = vmax.bf16 %v984_v52, %v976_v49  ;;  %v1236_v10 = vpop.permute.xlu1 %1235 }
 0x2db   : > { %2558 = vmatprep.mubr.bf16.mxu1 %v992_v53 }
 0x2dc   : > { %2559 = vmatmul.mubr.bf16.gmra.mxu1 %v993_v54 }
 0x384   : > { %v2548_v5 = vpop.f32.mrf.mxu1 }
 0x386   : > { %v1095_v6 = vpop.f32.mrf.mxu1 }
 0x388   : > { %v2549_v9 = vpop.f32.mrf.mxu1 }
 0x389   : > { %v1159_v11 = vpack.c.bf16 %v2549_v9, %v2548_v5  ;;  %v1231_v9 = vpop.permute.xlu0 %1230 }
 0x38a   : > { %v1098_v12 = vpop.f32.mrf.mxu1 }
 0x38b   : > { %v1175_v13 = vadd.bf16 %v3151_v7, %v1159_v11  ;;  %v1158_v14 = vpack.c.bf16 %v1098_v12, %v1095_v6 }
 0x38c   : > { %v2552_v16 = vpop.f32.mrf.mxu1 }
 0x38d   : > { %v1183_v17 = vmul.bf16 1045249613, %v1175_v13  ;;  %v1174_v18 = vadd.bf16 %v3151_v7, %v1158_v14 }
 0x38e   : > { %v1111_v19 = vpop.f32.mrf.mxu1 }
 0x38f   : > { %v1182_v21 = vmul.bf16 1045249613, %v1174_v18  ;;  %v1191_v23 = vmax.bf16 %v1183_v17, %v1175_v13  ;;  %v1251_v13 = vmul.bf16 %v3155_v15, %v1231_v9 }
 0x390   : > { %v2553_v24 = vpop.f32.mrf.mxu1 }
 0x391   : > { %v1190_v27 = vmax.bf16 %v1182_v21, %v1174_v18  ;;  %v1161_v28 = vpack.c.bf16 %v2553_v24, %v2552_v16  ;;  %v1254_v33 = vadd.bf16 %v1246_v22, %v1191_v23  ;;  %v1252_v16 = vmul.bf16 %v3155_v15, %v1236_v10  ;;  %v2805_v21 = vld [vmem:[#allocation5 + $0xb8] sm:$0xff]   ;;  %v2806_v22 = vld [vmem:[#allocation5 + $0xb0] sm:$0xff]   ;;  %v2807_v23 = vld [vmem:[#allocation5 + $0xa8] sm:$0xff]  }
 0x392   : > { %v1114_v29 = vpop.f32.mrf.mxu1  ;;  %2626 = vmatprep.subr.bf16.mxu0 %v2805_v21  ;;  %v2808_v15 = vld [vmem:[#allocation5 + $0xa0] sm:$0xff]   ;;  %v2809_v24 = vld [vmem:[#allocation5 + $0x98] sm:$0xff]  }
 0x393   : > { %v1177_v30 = vadd.bf16 %v3151_v7, %v1161_v28  ;;  %v1160_v31 = vpack.c.bf16 %v1114_v29, %v1111_v19  ;;  %v1253_v32 = vadd.bf16 %v1245_v25, %v1190_v27  ;;  %v2802_v19 = vld [vmem:[#allocation5 + $0x50] sm:$0xff]   ;;  %v1277_v25 = vld [vmem:[%s3275_s5] sm:$0x1] }
 0x394   : > { %v2556_v34 = vpop.f32.mrf.mxu1  ;;  %2604 = vmatprep.subr.bf16.mxu1 %v2802_v19  ;;  %v1431_v26 = vpack.c.bf16 %v1277_v25, %v1277_v25 }
 0x395   : > { %v1185_v35 = vmul.bf16 1045249613, %v1177_v30  ;;  %v1176_v36 = vadd.bf16 %v3151_v7, %v1160_v31  ;;  %2578 = vmatprep.mubr.bf16.mxu0 %v1253_v32  ;;  %2605 = vmatpush3.bf16.msra.mxu1 %v2802_v19  ;;  %v2813_v19 = vld [vmem:[#allocation5 + $0xf8] sm:$0xff]  }
 0x396   : > { %v1127_v37 = vpop.f32.mrf.mxu1  ;;  %2579 = vmatmul.mubr.bf16.vlgmr.msra.gmra.mxu0 %v1254_v33  ;;  %2606 = vmatprep.subr.bf16.mxu1 %v2803_v20  ;;  %v1433_v27 = vpack.i.b16 %v1431_v26, %v1431_v26 }
 0x397   : > { %v1184_v39 = vmul.bf16 1045249613, %v1176_v36  ;;  %v1193_v41 = vmax.bf16 %v1185_v35, %v1177_v30  ;;  %2627 = vmatpush3.bf16.msra.mxu0 %v2805_v21  ;;  %v2816_v21 = vld [vmem:[#allocation5 + $0xe0] sm:$0xff]  }
 0x398   : > { %v2557_v42 = vpop.f32.mrf.mxu1  ;;  %2628 = vmatprep.subr.bf16.mxu0 %v2806_v22  ;;  %v1438_v30 = vrot.slane %v1433_v27, %v3110_v50 }
 0x399   : > { %v1192_v44 = vmax.bf16 %v1184_v39, %v1176_v36  ;;  %v1163_v45 = vpack.c.bf16 %v2557_v42, %v2556_v34  ;;  %v1256_v52 = vadd.bf16 %v1248_v40, %v1193_v41  ;;  %2607 = vmatpush3.bf16.msra.mxu1 %v2803_v20  ;;  %v2814_v20 = vld [vmem:[#allocation5 + $0xf0] sm:$0xff]  }
 0x39a   : > { %v1130_v46 = vpop.f32.mrf.mxu1 }
 0x39b   : > { %v1179_v47 = vadd.bf16 %v3151_v7, %v1163_v45  ;;  %v1162_v48 = vpack.c.bf16 %v1130_v46, %v1127_v37  ;;  %v1255_v49 = vadd.bf16 %v1247_v43, %v1192_v44  ;;  %2629 = vmatpush3.bf16.msra.mxu0 %v2806_v22  ;;  %v2817_v22 = vld [vmem:[#allocation5 + $0xd8] sm:$0xff]  }
 0x39c   : > { %v2560_v51 = vpop.f32.mrf.mxu1  ;;  %2630 = vmatprep.subr.bf16.mxu0 %v2807_v23 }
 0x39d   : > { %v1187_v53 = vmul.bf16 1045249613, %v1179_v47  ;;  %v1178_v54 = vadd.bf16 %v3151_v7, %v1162_v48  ;;  %2582 = vmatprep.mubr.bf16.mxu0 %v1255_v49 }
 0x39e   : > { %v1143_v55 = vpop.f32.mrf.mxu1  ;;  %2583 = vmatmul.mubr.bf16.gmra.mxu0 %v1256_v52 }
 0x39f   : > { %v1186_v56 = vmul.bf16 1045249613, %v1178_v54  ;;  %v1195_v58 = vmax.bf16 %v1187_v53, %v1179_v47  ;;  %2631 = vmatpush3.bf16.msra.mxu0 %v2807_v23  ;;  %v2273_v23 = vld [vmem:[%s3275_s5 + $0x1] sm:$0x1] }
 0x3a0   : > { %v2561_v59 = vpop.f32.mrf.mxu1  ;;  %2632 = vmatprep.subr.bf16.mxu0 %v2808_v15 }
 0x3a1   : > { %v1194_v62 = vmax.bf16 %v1186_v56, %v1178_v54  ;;  %v1165_v63 = vpack.c.bf16 %v2561_v59, %v2560_v51  ;;  %v1258_v5 = vadd.bf16 %v1250_v0, %v1195_v58 }
 0x3a2   : > { %v1146_v1 = vpop.f32.mrf.mxu1 }
 0x3a3   : > { %v1181_v2 = vadd.bf16 %v3151_v7, %v1165_v63  ;;  %v1164_v3 = vpack.c.bf16 %v1146_v1, %v1143_v55  ;;  %v1257_v4 = vadd.bf16 %v1249_v60, %v1194_v62  ;;  %2633 = vmatpush3.bf16.msra.mxu0 %v2808_v15  ;;  %v1635_v15 = vpack.c.bf16 %v2273_v23, %v2273_v23 }
 0x3a4   : > { %2634 = vmatprep.subr.bf16.mxu0 %v2809_v24 }
 0x3a5   : > { %v1189_v6 = vmul.bf16 1045249613, %v1181_v2  ;;  %v1180_v8 = vadd.bf16 %v3151_v7, %v1164_v3  ;;  %2586 = vmatprep.mubr.bf16.mxu0 %v1257_v4  ;;  %v2804_v7 = vld [vmem:[#allocation5 + $0x40] sm:$0xff]  }
 0x3a6   : > { %2587 = vmatmul.mubr.bf16.gmra.mxu0 %v1258_v5  ;;  %2608 = vmatprep.subr.bf16.mxu1 %v2804_v7 }
 0x3a7   : > { %v1188_v11 = vmul.bf16 1045249613, %v1180_v8  ;;  %v1197_v12 = vmax.bf16 %v1189_v6, %v1181_v2  ;;  %2609 = vmatpush3.bf16.msra.mxu1 %v2804_v7  ;;  %2635 = vmatpush3.bf16.msra.mxu0 %v2809_v24  ;;  %v2815_v7 = vld [vmem:[#allocation5 + $0xe8] sm:$0xff]   ;;  %v1637_v24 = vpack.i.b16 %v1635_v15, %v1635_v15 }
 0x3a8   : > { %2658 = vmatprep.subr.bf16.mxu1 %v2813_v19 }
 0x3a9   : > { %v1196_v14 = vmax.bf16 %v1188_v11, %v1180_v8  ;;  %v1260_v18 = vadd.bf16 %v1252_v16, %v1197_v12  ;;  %v2810_v16 = vld [vmem:[#allocation5 + $0x90] sm:$0xff]   ;;  %v1642_v27 = vrot.slane %v1637_v24, %v3110_v50 }
 0x3aa   : > { %2636 = vmatprep.subr.bf16.mxu0 %v2810_v16 }
 0x3ab   : > { %v1259_v17 = vadd.bf16 %v1251_v13, %v1196_v14  ;;  %2637 = vmatpush3.bf16.msra.mxu0 %v2810_v16  ;;  %v2282_v16 = vld [vmem:[%s3275_s5 + $0x2] sm:$0x1] }
 0x3ad   : > { %2590 = vmatprep.mubr.bf16.mxu0 %v1259_v17  ;;  %v2811_v17 = vld [vmem:[#allocation5 + $0x88] sm:$0xff]  }
 0x3ae   : > { %2591 = vmatmul.mubr.bf16.gmra.mxu0 %v1260_v18  ;;  %2638 = vmatprep.subr.bf16.mxu0 %v2811_v17  ;;  %v2812_v18 = vld [vmem:[#allocation5 + $0x80] sm:$0xff]  }
 0x3af   : > { %2639 = vmatpush3.bf16.msra.mxu0 %v2811_v17  ;;  %v1839_v17 = vpack.c.bf16 %v2282_v16, %v2282_v16 }
 0x3b0   : > { %2640 = vmatprep.subr.bf16.mxu0 %v2812_v18 }
 0x3b3   : > { %2641 = vmatpush3.bf16.msra.mxu0 %v2812_v18  ;;  %v1841_v18 = vpack.i.b16 %v1839_v17, %v1839_v17 }
 0x456   : > { %v2580_v28 = vpop.f32.mrf.mxu0 }
 0x458   : > { %v1360_v29 = vpop.f32.mrf.mxu0 }
 0x45a   : > { %v2581_v31 = vpop.f32.mrf.mxu0 }
 0x45b   : > { %v1424_v32 = vpack.c.bf16 %v2581_v31, %v2580_v28 }
 0x45c   : > { %v1363_v33 = vpop.f32.mrf.mxu0 }
 0x45d   : > { %v1440_v34 = vadd.bf16 %v1438_v30, %v1424_v32  ;;  %v1423_v35 = vpack.c.bf16 %v1363_v33, %v1360_v29 }
 0x45e   : > { %v2584_v36 = vpop.f32.mrf.mxu0 }
 0x45f   : > { %v1439_v37 = vadd.bf16 %v1438_v30, %v1423_v35  ;;  %v1448_v38 = vmul.bf16 1045249613, %v1440_v34 }
 0x460   : > { %v1376_v39 = vpop.f32.mrf.mxu0 }
 0x461   : > { %v1447_v40 = vmul.bf16 1045249613, %v1439_v37  ;;  %v1456_v44 = vmax.bf16 %v1448_v38, %v1440_v34 }
 0x462   : > { %v2585_v41 = vpop.f32.mrf.mxu0 }
 0x463   : > { %v1426_v42 = vpack.c.bf16 %v2585_v41, %v2584_v36  ;;  %v1455_v43 = vmax.bf16 %v1447_v40, %v1439_v37 }
 0x464   : > { %v1379_v45 = vpop.f32.mrf.mxu0 }
 0x465   : > { %v1442_v46 = vadd.bf16 %v1438_v30, %v1426_v42  ;;  %v1425_v47 = vpack.c.bf16 %v1379_v45, %v1376_v39  ;;  %2610 = vmatprep.mubr.bf16.mxu1 %v1455_v43 }
 0x466   : > { %v2588_v48 = vpop.f32.mrf.mxu0  ;;  %2611 = vmatmul.mubr.bf16.vlgmr.msra.gmra.mxu1 %v1456_v44 }
 0x467   : > { %v1441_v49 = vadd.bf16 %v1438_v30, %v1425_v47  ;;  %v1450_v51 = vmul.bf16 1045249613, %v1442_v46  ;;  %2659 = vmatpush3.bf16.msra.mxu1 %v2813_v19 }
 0x468   : > { %v1392_v52 = vpop.f32.mrf.mxu0  ;;  %2660 = vmatprep.subr.bf16.mxu1 %v2814_v20 }
 0x469   : > { %v1449_v53 = vmul.bf16 1045249613, %v1441_v49  ;;  %v1458_v58 = vmax.bf16 %v1450_v51, %v1442_v46 }
 0x46a   : > { %v2589_v54 = vpop.f32.mrf.mxu0 }
 0x46b   : > { %v1428_v55 = vpack.c.bf16 %v2589_v54, %v2588_v48  ;;  %v1457_v56 = vmax.bf16 %v1449_v53, %v1441_v49  ;;  %2661 = vmatpush3.bf16.msra.mxu1 %v2814_v20 }
 0x46c   : > { %v1395_v57 = vpop.f32.mrf.mxu0  ;;  %2662 = vmatprep.subr.bf16.mxu1 %v2815_v7 }
 0x46d   : > { %v1444_v59 = vadd.bf16 %v1438_v30, %v1428_v55  ;;  %v1427_v60 = vpack.c.bf16 %v1395_v57, %v1392_v52  ;;  %2614 = vmatprep.mubr.bf16.mxu1 %v1457_v56 }
 0x46e   : > { %v2592_v61 = vpop.f32.mrf.mxu0  ;;  %2615 = vmatmul.mubr.bf16.gmra.mxu1 %v1458_v58 }
 0x46f   : > { %v1443_v62 = vadd.bf16 %v1438_v30, %v1427_v60  ;;  %v1452_v63 = vmul.bf16 1045249613, %v1444_v59  ;;  %2663 = vmatpush3.bf16.msra.mxu1 %v2815_v7  ;;  %v1846_v7 = vrot.slane %v1841_v18, %v3110_v50 }
 0x470   : > { %v1408_v0 = vpop.f32.mrf.mxu0  ;;  %2664 = vmatprep.subr.bf16.mxu1 %v2816_v21 }
 0x471   : > { %v1451_v1 = vmul.bf16 1045249613, %v1443_v62  ;;  %v1460_v6 = vmax.bf16 %v1452_v63, %v1444_v59 }
 0x472   : > { %v2593_v2 = vpop.f32.mrf.mxu0 }
 0x473   : > { %v1430_v3 = vpack.c.bf16 %v2593_v2, %v2592_v61  ;;  %v1459_v4 = vmax.bf16 %v1451_v1, %v1443_v62  ;;  %2665 = vmatpush3.bf16.msra.mxu1 %v2816_v21 }
 0x474   : > { %v1411_v5 = vpop.f32.mrf.mxu0  ;;  %2666 = vmatprep.subr.bf16.mxu1 %v2817_v22 }
 0x475   : > { %v1446_v8 = vadd.bf16 %v1438_v30, %v1430_v3  ;;  %v1429_v9 = vpack.c.bf16 %v1411_v5, %v1408_v0  ;;  %2618 = vmatprep.mubr.bf16.mxu1 %v1459_v4 }
 0x476   : > { %2619 = vmatmul.mubr.bf16.gmra.mxu1 %v1460_v6 }
 0x477   : > { %v1445_v10 = vadd.bf16 %v1438_v30, %v1429_v9  ;;  %v1454_v11 = vmul.bf16 1045249613, %v1446_v8  ;;  %2667 = vmatpush3.bf16.msra.mxu1 %v2817_v22 }
 0x479   : > { %v1453_v12 = vmul.bf16 1045249613, %v1445_v10  ;;  %v1462_v14 = vmax.bf16 %v1454_v11, %v1446_v8 }
 0x47b   : > { %v1461_v13 = vmax.bf16 %v1453_v12, %v1445_v10  ;;  %v2818_v12 = vld [vmem:[#allocation5 + $0xd0] sm:$0xff]  }
 0x47c   : > { %2668 = vmatprep.subr.bf16.mxu1 %v2818_v12 }
 0x47d   : > { %2622 = vmatprep.mubr.bf16.mxu1 %v1461_v13  ;;  %2669 = vmatpush3.bf16.msra.mxu1 %v2818_v12  ;;  %v2819_v13 = vld [vmem:[#allocation5 + $0xc8] sm:$0xff]  }
 0x47e   : > { %2623 = vmatmul.mubr.bf16.gmra.mxu1 %v1462_v14  ;;  %2670 = vmatprep.subr.bf16.mxu1 %v2819_v13  ;;  %v2820_v14 = vld [vmem:[#allocation5 + $0xc0] sm:$0xff]  }
 0x481   : > { %2671 = vmatpush3.bf16.msra.mxu1 %v2819_v13 }
 0x482   : > { %2672 = vmatprep.subr.bf16.mxu1 %v2820_v14 }
 0x485   : > { %2673 = vmatpush3.bf16.msra.mxu1 %v2820_v14 }
 0x526   : > { %v2612_v25 = vpop.f32.mrf.mxu1 }
 0x528   : > { %v1564_v26 = vpop.f32.mrf.mxu1 }
 0x52a   : > { %v2613_v28 = vpop.f32.mrf.mxu1 }
 0x52b   : > { %v1628_v29 = vpack.c.bf16 %v2613_v28, %v2612_v25 }
 0x52c   : > { %v1567_v30 = vpop.f32.mrf.mxu1 }
 0x52d   : > { %v1644_v31 = vadd.bf16 %v1642_v27, %v1628_v29  ;;  %v1627_v32 = vpack.c.bf16 %v1567_v30, %v1564_v26 }
 0x52e   : > { %v2616_v33 = vpop.f32.mrf.mxu1 }
 0x52f   : > { %v1643_v34 = vadd.bf16 %v1642_v27, %v1627_v32  ;;  %v1652_v35 = vmul.bf16 1045249613, %v1644_v31 }
 0x530   : > { %v1580_v36 = vpop.f32.mrf.mxu1 }
 0x531   : > { %v1651_v37 = vmul.bf16 1045249613, %v1643_v34  ;;  %v1660_v41 = vmax.bf16 %v1652_v35, %v1644_v31 }
 0x532   : > { %v2617_v38 = vpop.f32.mrf.mxu1 }
 0x533   : > { %v1630_v39 = vpack.c.bf16 %v2617_v38, %v2616_v33  ;;  %v1659_v40 = vmax.bf16 %v1651_v37, %v1643_v34 }
 0x534   : > { %v1583_v42 = vpop.f32.mrf.mxu1 }
 0x535   : > { %v1646_v43 = vadd.bf16 %v1642_v27, %v1630_v39  ;;  %v1629_v44 = vpack.c.bf16 %v1583_v42, %v1580_v36  ;;  %2642 = vmatprep.mubr.bf16.mxu0 %v1659_v40 }
 0x536   : > { %v2620_v45 = vpop.f32.mrf.mxu1  ;;  %2643 = vmatmul.mubr.bf16.vlgmr.msra.gmra.mxu0 %v1660_v41 }
 0x537   : > { %v1645_v46 = vadd.bf16 %v1642_v27, %v1629_v44  ;;  %v1654_v47 = vmul.bf16 1045249613, %v1646_v43 }
 0x538   : > { %v1596_v48 = vpop.f32.mrf.mxu1 }
 0x539   : > { %v1653_v49 = vmul.bf16 1045249613, %v1645_v46  ;;  %v1662_v55 = vmax.bf16 %v1654_v47, %v1646_v43 }
 0x53a   : > { %v2621_v51 = vpop.f32.mrf.mxu1 }
 0x53b   : > { %v1632_v52 = vpack.c.bf16 %v2621_v51, %v2620_v45  ;;  %v1661_v53 = vmax.bf16 %v1653_v49, %v1645_v46 }
 0x53c   : > { %v1599_v54 = vpop.f32.mrf.mxu1 }
 0x53d   : > { %v1648_v56 = vadd.bf16 %v1642_v27, %v1632_v52  ;;  %v1631_v57 = vpack.c.bf16 %v1599_v54, %v1596_v48  ;;  %2646 = vmatprep.mubr.bf16.mxu0 %v1661_v53 }
 0x53e   : > { %v2624_v58 = vpop.f32.mrf.mxu1  ;;  %2647 = vmatmul.mubr.bf16.gmra.mxu0 %v1662_v55 }
 0x53f   : > { %v1647_v59 = vadd.bf16 %v1642_v27, %v1631_v57  ;;  %v1656_v60 = vmul.bf16 1045249613, %v1648_v56 }
 0x540   : > { %v1612_v61 = vpop.f32.mrf.mxu1 }
 0x541   : > { %v1655_v62 = vmul.bf16 1045249613, %v1647_v59  ;;  %v1664_v3 = vmax.bf16 %v1656_v60, %v1648_v56 }
 0x542   : > { %v2625_v63 = vpop.f32.mrf.mxu1 }
 0x543   : > { %v1634_v0 = vpack.c.bf16 %v2625_v63, %v2624_v58  ;;  %v1663_v1 = vmax.bf16 %v1655_v62, %v1647_v59 }
 0x544   : > { %v1615_v2 = vpop.f32.mrf.mxu1 }
 0x545   : > { %v1650_v4 = vadd.bf16 %v1642_v27, %v1634_v0  ;;  %v1633_v5 = vpack.c.bf16 %v1615_v2, %v1612_v61  ;;  %2650 = vmatprep.mubr.bf16.mxu0 %v1663_v1 }
 0x546   : > { %2651 = vmatmul.mubr.bf16.gmra.mxu0 %v1664_v3  ;;  %v2291_v3 = vld [vmem:[%s3275_s5 + $0x3] sm:$0x1] }
 0x547   : > { %v1649_v6 = vadd.bf16 %v1642_v27, %v1633_v5  ;;  %v1658_v8 = vmul.bf16 1045249613, %v1650_v4 }
 0x549   : > { %v1657_v9 = vmul.bf16 1045249613, %v1649_v6  ;;  %v1666_v11 = vmax.bf16 %v1658_v8, %v1650_v4  ;;  %v2043_v4 = vpack.c.bf16 %v2291_v3, %v2291_v3 }
 0x54b   : > { %v1665_v10 = vmax.bf16 %v1657_v9, %v1649_v6  ;;  %v2045_v5 = vpack.i.b16 %v2043_v4, %v2043_v4 }
 0x54d   : > { %2654 = vmatprep.mubr.bf16.mxu0 %v1665_v10  ;;  %v3188_v9 = vrot.slane %v2045_v5, %v3110_v50 }
 0x54e   : > { %2655 = vmatmul.mubr.bf16.gmra.mxu0 %v1666_v11 }
 0x5f6   : > { %v2644_v19 = vpop.f32.mrf.mxu0 }
 0x5f8   : > { %v1768_v20 = vpop.f32.mrf.mxu0 }
 0x5fa   : > { %v2645_v21 = vpop.f32.mrf.mxu0 }
 0x5fb   : > { %v1832_v22 = vpack.c.bf16 %v2645_v21, %v2644_v19 }
 0x5fc   : > { %v1771_v23 = vpop.f32.mrf.mxu0 }
 0x5fd   : > { %v1848_v15 = vadd.bf16 %v1846_v7, %v1832_v22  ;;  %v1831_v24 = vpack.c.bf16 %v1771_v23, %v1768_v20 }
 0x5fe   : > { %v2648_v25 = vpop.f32.mrf.mxu0 }
 0x5ff   : > { %v1847_v26 = vadd.bf16 %v1846_v7, %v1831_v24  ;;  %v1856_v27 = vmul.bf16 1045249613, %v1848_v15 }
 0x600   : > { %v1784_v28 = vpop.f32.mrf.mxu0 }
 0x601   : > { %v1855_v29 = vmul.bf16 1045249613, %v1847_v26  ;;  %v1864_v33 = vmax.bf16 %v1856_v27, %v1848_v15 }
 0x602   : > { %v2649_v30 = vpop.f32.mrf.mxu0 }
 0x603   : > { %v1834_v31 = vpack.c.bf16 %v2649_v30, %v2648_v25  ;;  %v1863_v32 = vmax.bf16 %v1855_v29, %v1847_v26 }
 0x604   : > { %v1787_v34 = vpop.f32.mrf.mxu0 }
 0x605   : > { %v1850_v35 = vadd.bf16 %v1846_v7, %v1834_v31  ;;  %v1833_v36 = vpack.c.bf16 %v1787_v34, %v1784_v28  ;;  %2674 = vmatprep.mubr.bf16.mxu1 %v1863_v32 }
 0x606   : > { %v2652_v37 = vpop.f32.mrf.mxu0  ;;  %2675 = vmatmul.mubr.bf16.vlgmr.msra.gmra.mxu1 %v1864_v33 }
 0x607   : > { %v1849_v38 = vadd.bf16 %v1846_v7, %v1833_v36  ;;  %v1858_v39 = vmul.bf16 1045249613, %v1850_v35 }
 0x608   : > { %v1800_v40 = vpop.f32.mrf.mxu0 }
 0x609   : > { %v1857_v41 = vmul.bf16 1045249613, %v1849_v38  ;;  %v1866_v46 = vmax.bf16 %v1858_v39, %v1850_v35 }
 0x60a   : > { %v2653_v42 = vpop.f32.mrf.mxu0 }
 0x60b   : > { %v1836_v43 = vpack.c.bf16 %v2653_v42, %v2652_v37  ;;  %v1865_v44 = vmax.bf16 %v1857_v41, %v1849_v38 }
 0x60c   : > { %v1803_v45 = vpop.f32.mrf.mxu0 }
 0x60d   : > { %v1852_v47 = vadd.bf16 %v1846_v7, %v1836_v43  ;;  %v1835_v48 = vpack.c.bf16 %v1803_v45, %v1800_v40  ;;  %2678 = vmatprep.mubr.bf16.mxu1 %v1865_v44 }
 0x60e   : > { %v2656_v49 = vpop.f32.mrf.mxu0  ;;  %2679 = vmatmul.mubr.bf16.gmra.mxu1 %v1866_v46 }
 0x60f   : > { %v1851_v51 = vadd.bf16 %v1846_v7, %v1835_v48  ;;  %v1860_v52 = vmul.bf16 1045249613, %v1852_v47 }
 0x610   : > { %v1816_v53 = vpop.f32.mrf.mxu0 }
 0x611   : > { %v1859_v54 = vmul.bf16 1045249613, %v1851_v51  ;;  %v1868_v59 = vmax.bf16 %v1860_v52, %v1852_v47 }
 0x612   : > { %v2657_v55 = vpop.f32.mrf.mxu0 }
 0x613   : > { %v1838_v56 = vpack.c.bf16 %v2657_v55, %v2656_v49  ;;  %v1867_v57 = vmax.bf16 %v1859_v54, %v1851_v51 }
 0x614   : > { %v1819_v58 = vpop.f32.mrf.mxu0 }
 0x615   : > { %v1854_v60 = vadd.bf16 %v1846_v7, %v1838_v56  ;;  %v1837_v61 = vpack.c.bf16 %v1819_v58, %v1816_v53  ;;  %2682 = vmatprep.mubr.bf16.mxu1 %v1867_v57 }
 0x616   : > { %2683 = vmatmul.mubr.bf16.gmra.mxu1 %v1868_v59 }
 0x617   : > { %v1853_v62 = vadd.bf16 %v1846_v7, %v1837_v61  ;;  %v1862_v63 = vmul.bf16 1045249613, %v1854_v60 }
 0x619   : > { %v1861_v0 = vmul.bf16 1045249613, %v1853_v62  ;;  %v1870_v2 = vmax.bf16 %v1862_v63, %v1854_v60 }
 0x61b   : > { %v1869_v1 = vmax.bf16 %v1861_v0, %v1853_v62 }
 0x61d   : > { %2686 = vmatprep.mubr.bf16.mxu1 %v1869_v1 }
 0x61e   : > { %2687 = vmatmul.mubr.bf16.gmra.mxu1 %v1870_v2 }
 0x6c6   : > { %v2676_v6 = vpop.f32.mrf.mxu1 }
 0x6c8   : > { %v1972_v8 = vpop.f32.mrf.mxu1 }
 0x6ca   : > { %v2677_v10 = vpop.f32.mrf.mxu1 }
 0x6cb   : > { %v2036_v11 = vpack.c.bf16 %v2677_v10, %v2676_v6 }
 0x6cc   : > { %v1975_v12 = vpop.f32.mrf.mxu1 }
 0x6cd   : > { %v2052_v13 = vadd.bf16 %v3188_v9, %v2036_v11  ;;  %v2035_v14 = vpack.c.bf16 %v1975_v12, %v1972_v8 }
 0x6ce   : > { %v2680_v16 = vpop.f32.mrf.mxu1 }
 0x6cf   : > { %v2060_v17 = vmul.bf16 1045249613, %v2052_v13  ;;  %v2051_v18 = vadd.bf16 %v3188_v9, %v2035_v14 }
 0x6d0   : > { %v1988_v19 = vpop.f32.mrf.mxu1 }
 0x6d1   : > { %v2068_v20 = vmax.bf16 %v2060_v17, %v2052_v13  ;;  %v2059_v7 = vmul.bf16 1045249613, %v2051_v18 }
 0x6d2   : > { %v2681_v21 = vpop.f32.mrf.mxu1 }
 0x6d3   : > { %v2077_v22 = vunpack.c.l.bf16 %v2068_v20  ;;  %v2078_v50 = vunpack.c.h.bf16 %v2068_v20  ;;  %v2067_v23 = vmax.bf16 %v2059_v7, %v2051_v18  ;;  %v2038_v15 = vpack.c.bf16 %v2681_v21, %v2680_v16 }
 0x6d4   : > { %v1991_v24 = vpop.f32.mrf.mxu1 }
 0x6d5   : > { %2093 = vst [vmem:[%s3195_s14 + $0x10] sm:$0xff] %v2077_v22  ;;  %2094 = vst [vmem:[%s3195_s14 + $0x18] sm:$0xff] %v2078_v50  ;;  %v2075_v25 = vunpack.c.l.bf16 %v2067_v23  ;;  %v2076_v26 = vunpack.c.h.bf16 %v2067_v23  ;;  %v2054_v27 = vadd.bf16 %v3188_v9, %v2038_v15  ;;  %v2037_v28 = vpack.c.bf16 %v1991_v24, %v1988_v19 }
 0x6d6   : > { %v2684_v29 = vpop.f32.mrf.mxu1 }
 0x6d7   : > { %2091 = vst [vmem:[%s3195_s14] sm:$0xff] %v2075_v25  ;;  %2092 = vst [vmem:[%s3195_s14 + $0x8] sm:$0xff] %v2076_v26  ;;  %v2062_v30 = vmul.bf16 1045249613, %v2054_v27  ;;  %v2053_v31 = vadd.bf16 %v3188_v9, %v2037_v28 }
 0x6d8   : > { %v2004_v32 = vpop.f32.mrf.mxu1 }
 0x6d9   : > { %v2070_v33 = vmax.bf16 %v2062_v30, %v2054_v27  ;;  %v2061_v34 = vmul.bf16 1045249613, %v2053_v31 }
 0x6da   : > { %v2685_v35 = vpop.f32.mrf.mxu1 }
 0x6db   : > { %v2081_v36 = vunpack.c.l.bf16 %v2070_v33  ;;  %v2082_v37 = vunpack.c.h.bf16 %v2070_v33  ;;  %v2069_v38 = vmax.bf16 %v2061_v34, %v2053_v31  ;;  %v2040_v39 = vpack.c.bf16 %v2685_v35, %v2684_v29 }
 0x6dc   : > { %v2007_v40 = vpop.f32.mrf.mxu1 }
 0x6dd   : > { %2097 = vst [vmem:[%s3195_s14 + $0x30] sm:$0xff] %v2081_v36  ;;  %2098 = vst [vmem:[%s3195_s14 + $0x38] sm:$0xff] %v2082_v37  ;;  %v2079_v41 = vunpack.c.l.bf16 %v2069_v38  ;;  %v2080_v42 = vunpack.c.h.bf16 %v2069_v38  ;;  %v2056_v43 = vadd.bf16 %v3188_v9, %v2040_v39  ;;  %v2039_v44 = vpack.c.bf16 %v2007_v40, %v2004_v32 }
 0x6de   : > { %v2688_v45 = vpop.f32.mrf.mxu1 }
 0x6df   : > { %2095 = vst [vmem:[%s3195_s14 + $0x20] sm:$0xff] %v2079_v41  ;;  %2096 = vst [vmem:[%s3195_s14 + $0x28] sm:$0xff] %v2080_v42  ;;  %v2064_v46 = vmul.bf16 1045249613, %v2056_v43  ;;  %v2055_v47 = vadd.bf16 %v3188_v9, %v2039_v44 }
 0x6e0   : > { %v2020_v48 = vpop.f32.mrf.mxu1 }
 0x6e1   : > { %v2072_v49 = vmax.bf16 %v2064_v46, %v2056_v43  ;;  %v2063_v51 = vmul.bf16 1045249613, %v2055_v47 }
 0x6e2   : > { %v2689_v52 = vpop.f32.mrf.mxu1 }
 0x6e3   : > { %v2085_v53 = vunpack.c.l.bf16 %v2072_v49  ;;  %v2086_v54 = vunpack.c.h.bf16 %v2072_v49  ;;  %v2071_v55 = vmax.bf16 %v2063_v51, %v2055_v47  ;;  %v2042_v56 = vpack.c.bf16 %v2689_v52, %v2688_v45 }
 0x6e4   : > { %v2023_v57 = vpop.f32.mrf.mxu1 }
 0x6e5   : > { %2101 = vst [vmem:[%s3195_s14 + $0x50] sm:$0xff] %v2085_v53  ;;  %2102 = vst [vmem:[%s3195_s14 + $0x58] sm:$0xff] %v2086_v54  ;;  %v2083_v58 = vunpack.c.l.bf16 %v2071_v55  ;;  %v2084_v59 = vunpack.c.h.bf16 %v2071_v55  ;;  %v2058_v60 = vadd.bf16 %v3188_v9, %v2042_v56  ;;  %v2041_v61 = vpack.c.bf16 %v2023_v57, %v2020_v48 }
 0x6e7   : > { %2099 = vst [vmem:[%s3195_s14 + $0x40] sm:$0xff] %v2083_v58  ;;  %2100 = vst [vmem:[%s3195_s14 + $0x48] sm:$0xff] %v2084_v59  ;;  %v2066_v62 = vmul.bf16 1045249613, %v2058_v60  ;;  %v2057_v63 = vadd.bf16 %v3188_v9, %v2041_v61 }
 0x6e9   : > { %v2074_v0 = vmax.bf16 %v2066_v62, %v2058_v60  ;;  %v2065_v1 = vmul.bf16 1045249613, %v2057_v63 }
 0x6eb   : > { %v2089_v2 = vunpack.c.l.bf16 %v2074_v0  ;;  %v2090_v3 = vunpack.c.h.bf16 %v2074_v0  ;;  %v2073_v4 = vmax.bf16 %v2065_v1, %v2057_v63 }
 0x6ed   : > { %2105 = vst [vmem:[%s3195_s14 + $0x70] sm:$0xff] %v2089_v2  ;;  %2106 = vst [vmem:[%s3195_s14 + $0x78] sm:$0xff] %v2090_v3  ;;  %v2087_v5 = vunpack.c.l.bf16 %v2073_v4  ;;  %v2088_v6 = vunpack.c.h.bf16 %v2073_v4 }
 0x6ef   : > { %2103 = vst [vmem:[%s3195_s14 + $0x60] sm:$0xff] %v2087_v5  ;;  %2104 = vst [vmem:[%s3195_s14 + $0x68] sm:$0xff] %v2088_v6 }
 0x6f0   : > { %2886 = shalt.err (!%p2883_p3)
}
 0x6f1   : > { %s2887_s23 = scalar_lea.hbm %s3220_s18, 2048  ;;  %s2891_s9 = scalar_lea.hbm %s3277_s7, 4096 }
 0x6f2   : > { %p2888_p2 = scmp.ne.s32.totalorder %s3220_s18, %s2887_s23  ;;  %p2892_p7 = scmp.lt.s32.totalorder %s3220_s18, %s3277_s7 }
 0x6f3   : > { %p2893_p6 = scmp.lt.s32.totalorder %s2891_s9, %s2887_s23 }
 0x6f4   : > { %p2889_p4 = pnand %p2888_p2, %p3029_p5 }
 0x6f5   : > { %p2894_p9 = por %p2893_p6, %p2892_p7 }
 0x6f6   : > { %p2890_p13 = pneg %p2889_p4 }
 0x6f8   : > { %p2895_p10 = pnand %p2894_p9, %p2890_p13 }
 0x6fa   : > { %2898 = shalt.err (!%p2895_p10)
}
 0x6fb   : > { %s2949_s16 = smov 128   ;;  %s2950_s17 = smov 8  }
 0x6fc   : > { %2698 = dma.vmem_to_hbm [thread:$0]  (%p3029_p5), %s3222_s15, 2048, %s3220_s18, %s3230_s28, %s2949_s16, %s2949_s16, %s2950_s17  }
 0x6fd PF: > { %p2715_p12 = scmp.ge.s32.totalorder %s2941_s27, 2  ;;  %s2136_s19 = sand.u32 1, %s2929_s24  }
 0x6fe   : > { %p3287_p8 = scmp.ne.s32.totalorder %s3280_s12, 0  ;;  %s2137_s20 = scalar_lea.sflag [#allocation4], %s2136_s19 }
 0x700   : > { %p2708_p11 = pnand %p2715_p12, %p3287_p8 }
 0x702   : > { %p2709_p0 = pneg %p2708_p11 }
 0x704   : > { %2924 = dma.done.wait (%p2709_p0), %s2137_s20, 2048  }
 0x705   : > { %2926 = vsyncadd (%p2709_p0), %s2137_s20, 4294965248  ;;  %p19_p1 = scmp.ge.s32.totalorder %s3016_s30, 4   ;;  %s3288_s24 = smov %s2933_s25 }
 0x706   : > { %s3289_s25 = smov %s2937_s26  ;;  %s3290_s26 = smov %s3027_s10 }
 0x707   : > { %s3291_s27 = smov %s3016_s30  ;;  %21 = sbr.rel (!%p19_p1) target bundleno = 5 (0x5), region = 107 }
 0x70c   :  { %2142 = vsyncpa [#allocation3], 1 }
 0x70d   :  { %2144 = vsyncpa [#allocation3 + $0x1], 1 }
 0x70e   :  { %2145 = vsyncpa [#allocation6], 1 }
 0x70f   :  { %2146 = vsyncpa [#allocation4], 1 }
 0x710   :  { %2148 = vsyncpa [#allocation4 + $0x1], 1 }

</bundles_post_ra>
